<compile_context>
chip_gen: v7x
topology: tpu7x:2x2x1
jax: 0.10.0
libtpu: 0.0.40
codegen_flags: <defaults>
</compile_context>

<pallas_src>
import functools
import math

import jax
import jax.numpy as jnp
from jax import lax
from jax.experimental import pallas as pl
from jax.experimental.pallas import tpu as pltpu

# Make the pure-JAX reference use full-f32 matmuls so it matches the kernel's
# preferred_element_type=f32 MXU accumulation.
jax.config.update("jax_default_matmul_precision", "highest")

_LN_EPS = 1e-5            # torch.nn.LayerNorm default
_GELU_C = 0.04475         # NewGELUActivation coefficient from the spec


# ---------------------------------------------------------------------------
# Fused encoder kernel: grid = (batch, layer); activation resident over layer
# ---------------------------------------------------------------------------
def _encoder_kernel(num_heads,
                    x_ref, g1_ref, b1_ref, qkvw_ref, qkvb_ref, wo_ref, bo_ref,
                    g2_ref, b2_ref, w1_ref, bm1_ref, w2_ref, bm2_ref, o_ref):
    S, H = x_ref.shape[1], x_ref.shape[2]
    hd = H // num_heads
    scale = 1.0 / math.sqrt(hd)
    layer = pl.program_id(1)

    # Seed the VMEM-resident activation (output block, constant over the
    # layer axis) with the encoder input at layer 0.
    @pl.when(layer == 0)
    def _():
        o_ref[...] = x_ref[...]

    x = o_ref[0].astype(jnp.float32)                                # (S, H)

    # ---- LayerNorm 1 -------------------------------------------------------
    mu = jnp.mean(x, axis=-1, keepdims=True)
    var = jnp.mean(jnp.square(x - mu), axis=-1, keepdims=True)
    xn = (x - mu) * lax.rsqrt(var + _LN_EPS)
    xn = xn * g1_ref[0] + b1_ref[0]

    # ---- merged QKV projection (FasterMultiHeadAttention) ------------------
    qkv = jnp.dot(xn, qkvw_ref[0],
                  preferred_element_type=jnp.float32) + qkvb_ref[0]  # (S, 3H)

    # ---- all heads batched: head = leading batch dim of one einsum ---------
    q3 = jnp.stack([qkv[:, h * hd:(h + 1) * hd]
                    for h in range(num_heads)], axis=0)              # (NH,S,hd)
    k3 = jnp.stack([qkv[:, H + h * hd:H + (h + 1) * hd]
                    for h in range(num_heads)], axis=0)
    v3 = jnp.stack([qkv[:, 2 * H + h * hd:2 * H + (h + 1) * hd]
                    for h in range(num_heads)], axis=0)

    s = jnp.einsum('hqd,hkd->hqk', q3, k3,
                   preferred_element_type=jnp.float32) * scale       # (NH,S,S)
    s = s - jnp.max(s, axis=-1, keepdims=True)
    e = jnp.exp(s)
    p = e * pl.reciprocal(jnp.sum(e, axis=-1, keepdims=True), approx=True)
    # TODO(synk): attn_dropout is identity in eval mode; training-mode random
    # masking is not implemented.
    ctx = jnp.einsum('hqk,hkd->hqd', p, v3,
                     preferred_element_type=jnp.float32)             # (NH,S,hd)

    # Head concat once, then a single (S,H)@(H,H) output projection.
    ctx_flat = jnp.concatenate([ctx[h] for h in range(num_heads)], axis=-1)
    attn = jnp.dot(ctx_flat, wo_ref[0],
                   preferred_element_type=jnp.float32) + bo_ref[0]

    x1 = x + attn                                                    # residual 1

    # ---- LayerNorm 2 + MLP --------------------------------------------------
    mu2 = jnp.mean(x1, axis=-1, keepdims=True)
    var2 = jnp.mean(jnp.square(x1 - mu2), axis=-1, keepdims=True)
    x2n = (x1 - mu2) * lax.rsqrt(var2 + _LN_EPS)
    x2n = x2n * g2_ref[0] + b2_ref[0]

    a = jnp.dot(x2n, w1_ref[0],
                preferred_element_type=jnp.float32) + bm1_ref[0]
    g = 0.5 * a * (1.0 + jnp.tanh(math.sqrt(2.0 / math.pi)
                                  * (a + _GELU_C * a * a * a)))
    mlp = jnp.dot(g, w2_ref[0],
                  preferred_element_type=jnp.float32) + bm2_ref[0]

    # Full, aligned block store; stays in VMEM until the batch index changes.
    o_ref[0] = (x1 + mlp).astype(o_ref.dtype)


# ---------------------------------------------------------------------------
# Wrapper: single pallas_call for the whole encoder
# ---------------------------------------------------------------------------
def _encoder_pallas(x, stacked, num_heads):
    B, S, H = x.shape
    L = stacked["qkv_w"].shape[0]
    I = stacked["w1"].shape[-1]

    def wspec(shape):
        # Stacked weight (L, *shape): one layer slab per inner grid step.
        n = len(shape)
        return pl.BlockSpec((1,) + shape, lambda b, l, _n=n: (l,) + (0,) * _n)

    grid_spec = pltpu.PrefetchScalarGridSpec(
        num_scalar_prefetch=0,
        grid=(B, L),                                   # batch outer, layer inner
        in_specs=[
            pl.BlockSpec((1, S, H), lambda b, l: (b, 0, 0)),   # x
            wspec((1, H)), wspec((1, H)),                      # ln1 gamma/beta
            wspec((H, 3 * H)), wspec((1, 3 * H)),              # qkv w/b
            wspec((H, H)), wspec((1, H)),                      # out-proj w/b
            wspec((1, H)), wspec((1, H)),                      # ln2 gamma/beta
            wspec((H, I)), wspec((1, I)),                      # mlp dense_1 w/b
            wspec((I, H)), wspec((1, H)),                      # mlp dense_2 w/b
        ],
        out_specs=pl.BlockSpec((1, S, H), lambda b, l: (b, 0, 0)),
    )

    flops = L * (2 * B * S * H * (3 * H + H + 2 * I)     # projections + MLP
                 + 4 * B * S * S * H)                    # scores + context
    transcendentals = L * (B * num_heads * S * S + B * S * I + 4 * B * S)
    bytes_accessed = 4 * (2 * B * S * H
                          + L * (4 * H * H + 2 * H * I + 7 * H + 2 * I))

    return pl.pallas_call(
        functools.partial(_encoder_kernel, num_heads),
        out_shape=jax.ShapeDtypeStruct((B, S, H), x.dtype),
        grid_spec=grid_spec,
        compiler_params=pltpu.CompilerParams(
            dimension_semantics=("parallel", "arbitrary")),
        cost_estimate=pl.CostEstimate(flops=flops,
                                      transcendentals=transcendentals,
                                      bytes_accessed=bytes_accessed),
    )(x,
      stacked["ln1_g"], stacked["ln1_b"], stacked["qkv_w"], stacked["qkv_b"],
      stacked["wo"], stacked["bo"], stacked["ln2_g"], stacked["ln2_b"],
      stacked["w1"], stacked["b1"], stacked["w2"], stacked["b2"])


@functools.partial(jax.jit, static_argnames=("num_heads",))
def encoder_forward(x, layer_params, num_heads):
    """Encoder.forward(x, output_attentions=False) -> x (the `(x, None)` tuple
    is reconstructed by the caller)."""
    # TODO(synk): output_attentions=True (returning per-layer attention probs)
    # is not implemented; only the default False path is supported.
    stacked = {k: jnp.stack([p[k] for p in layer_params])
               for k in layer_params[0]}
    return _encoder_pallas(x, stacked, num_heads)


# ---------------------------------------------------------------------------
# Pure-JAX reference mirroring the PyTorch forward (eval mode)
# ---------------------------------------------------------------------------
def _reference_block(x, p, num_heads):
    def ln(y, g, b):
        m = jnp.mean(y, -1, keepdims=True)
        v = jnp.mean(jnp.square(y - m), -1, keepdims=True)
        return (y - m) / jnp.sqrt(v + _LN_EPS) * g + b

    B, S, H = x.shape
    hd = H // num_heads
    h1 = ln(x, p["ln1_g"], p["ln1_b"])
    qkv = h1 @ p["qkv_w"] + p["qkv_b"]
    q, k, v = jnp.split(qkv, 3, axis=-1)
    q = q.reshape(B, S, num_heads, hd).transpose(0, 2, 1, 3)
    k = k.reshape(B, S, num_heads, hd).transpose(0, 2, 1, 3)
    v = v.reshape(B, S, num_heads, hd).transpose(0, 2, 1, 3)
    scores = q @ jnp.swapaxes(k, -1, -2) / math.sqrt(hd)
    probs = jax.nn.softmax(scores, axis=-1)
    ctx = (probs @ v).transpose(0, 2, 1, 3).reshape(B, S, H)
    x = x + (ctx @ p["wo"] + p["bo"])
    h2 = ln(x, p["ln2_g"], p["ln2_b"])
    a = h2 @ p["w1"] + p["b1"]
    g = 0.5 * a * (1.0 + jnp.tanh(math.sqrt(2.0 / math.pi)
                                  * (a + _GELU_C * a ** 3)))
    return x + (g @ p["w2"] + p["b2"])


def _reference_encoder(x, layer_params, num_heads):
    for p in layer_params:
        x = _reference_block(x, p, num_heads)
    return x


# ---------------------------------------------------------------------------
if __name__ == "__main__":
    # config: hidden_size=32, num_attention_heads=4, intermediate_size=64,
    #         num_hidden_layers=2, seq=16, batch=2, qkv_bias=True
    B, S, H, NH, I, L = 2, 16, 32, 4, 64, 2

    key = jax.random.PRNGKey(0)
    kx, key = jax.random.split(key)
    x = jax.random.normal(kx, (B, S, H), dtype=jnp.float32)

    def make_layer(k):
        ks = jax.random.split(k, 12)
        s = 0.05
        # Linear weights are stored as (in, out) == torch weight.T
        return dict(
            ln1_g=1.0 + 0.1 * jax.random.normal(ks[0], (1, H), jnp.float32),
            ln1_b=0.1 * jax.random.normal(ks[1], (1, H), jnp.float32),
            qkv_w=s * jax.random.normal(ks[2], (H, 3 * H), jnp.float32),
            qkv_b=s * jax.random.normal(ks[3], (1, 3 * H), jnp.float32),
            wo=s * jax.random.normal(ks[4], (H, H), jnp.float32),
            bo=s * jax.random.normal(ks[5], (1, H), jnp.float32),
            ln2_g=1.0 + 0.1 * jax.random.normal(ks[6], (1, H), jnp.float32),
            ln2_b=0.1 * jax.random.normal(ks[7], (1, H), jnp.float32),
            w1=s * jax.random.normal(ks[8], (H, I), jnp.float32),
            b1=s * jax.random.normal(ks[9], (1, I), jnp.float32),
            w2=s * jax.random.normal(ks[10], (I, H), jnp.float32),
            b2=s * jax.random.normal(ks[11], (1, H), jnp.float32),
        )

    params = tuple(make_layer(k) for k in jax.random.split(key, L))

    out = encoder_forward(x, params, num_heads=NH)
    out = jax.block_until_ready(out)
    result = (out, None)   # matches Encoder.forward(..., output_attentions=False)

    ref = _reference_encoder(x, params, NH)
    assert out.shape == (B, S, H), out.shape
    max_err = float(jnp.max(jnp.abs(out - ref)))
    assert jnp.allclose(out, ref, atol=2e-3, rtol=2e-3), max_err
    print("KERNEL_OK")
</pallas_src>

<mosaic_0001>
module attributes {stable_mosaic.version = 11 : i64} {
  func.func @_encoder_kernel(%arg0: i32, %arg1: i32, %arg2: memref<1x16x32xf32, #tpu.memory_space<vmem>>, %arg3: memref<1x1x32xf32, #tpu.memory_space<vmem>>, %arg4: memref<1x1x32xf32, #tpu.memory_space<vmem>>, %arg5: memref<1x32x96xf32, #tpu.memory_space<vmem>>, %arg6: memref<1x1x96xf32, #tpu.memory_space<vmem>>, %arg7: memref<1x32x32xf32, #tpu.memory_space<vmem>>, %arg8: memref<1x1x32xf32, #tpu.memory_space<vmem>>, %arg9: memref<1x1x32xf32, #tpu.memory_space<vmem>>, %arg10: memref<1x1x32xf32, #tpu.memory_space<vmem>>, %arg11: memref<1x32x64xf32, #tpu.memory_space<vmem>>, %arg12: memref<1x1x64xf32, #tpu.memory_space<vmem>>, %arg13: memref<1x64x32xf32, #tpu.memory_space<vmem>>, %arg14: memref<1x1x32xf32, #tpu.memory_space<vmem>>, %arg15: memref<1x16x32xf32, #tpu.memory_space<vmem>>) attributes {dimension_semantics = [#tpu.dimension_semantics<parallel>, #tpu.dimension_semantics<arbitrary>], iteration_bounds = array<i64: 2, 2>, scalar_prefetch = 0 : i64, scratch_operands = 0 : i64, tpu.core_type = #tpu.core_type<tc>, window_params = [{transform_indices = @transform_0, window_bounds = array<i64: 1, 16, 32>}, {transform_indices = @transform_1, window_bounds = array<i64: 1, 1, 32>}, {transform_indices = @transform_2, window_bounds = array<i64: 1, 1, 32>}, {transform_indices = @transform_3, window_bounds = array<i64: 1, 32, 96>}, {transform_indices = @transform_4, window_bounds = array<i64: 1, 1, 96>}, {transform_indices = @transform_5, window_bounds = array<i64: 1, 32, 32>}, {transform_indices = @transform_6, window_bounds = array<i64: 1, 1, 32>}, {transform_indices = @transform_7, window_bounds = array<i64: 1, 1, 32>}, {transform_indices = @transform_8, window_bounds = array<i64: 1, 1, 32>}, {transform_indices = @transform_9, window_bounds = array<i64: 1, 32, 64>}, {transform_indices = @transform_10, window_bounds = array<i64: 1, 1, 64>}, {transform_indices = @transform_11, window_bounds = array<i64: 1, 64, 32>}, {transform_indices = @transform_12, window_bounds = array<i64: 1, 1, 32>}, {transform_indices = @transform_13, window_bounds = array<i64: 1, 16, 32>}]} {
    %c0_i32 = arith.constant 0 : i32
    %0 = arith.cmpi eq, %arg1, %c0_i32 : i32
    %1 = arith.extui %0 : i1 to i32
    %c0_i32_0 = arith.constant 0 : i32
    %2 = arith.cmpi ne, %1, %c0_i32_0 : i32
    scf.if %2 {
      %c0_64 = arith.constant 0 : index
      %c0_65 = arith.constant 0 : index
      %c0_66 = arith.constant 0 : index
      %153 = vector.load %arg2[%c0_64, %c0_65, %c0_66] : memref<1x16x32xf32, #tpu.memory_space<vmem>>, vector<1x16x32xf32>
      %c0_67 = arith.constant 0 : index
      %c0_68 = arith.constant 0 : index
      %c0_69 = arith.constant 0 : index
      %154 = vector.load %arg15[%c0_67, %c0_68, %c0_69] : memref<1x16x32xf32, #tpu.memory_space<vmem>>, vector<1x16x32xf32>
      tpu.vector_store %arg15[%c0_67, %c0_68, %c0_69], %153 {strides = array<i32>} : memref<1x16x32xf32, #tpu.memory_space<vmem>>, vector<1x16x32xf32>,
    } else {
    }
    %c0 = arith.constant 0 : index
    %c0_1 = arith.constant 0 : index
    %c0_2 = arith.constant 0 : index
    %3 = vector.load %arg15[%c0, %c0_1, %c0_2] : memref<1x16x32xf32, #tpu.memory_space<vmem>>, vector<1x16x32xf32>
    %4 = vector.shape_cast %3 : vector<1x16x32xf32> to vector<16x32xf32>
    %cst = arith.constant dense<0.000000e+00> : vector<16xf32>
    %5 = vector.multi_reduction <add>, %4, %cst [1] : vector<16x32xf32> to vector<16xf32>
    %6 = vector.shape_cast %5 : vector<16xf32> to vector<16x1xf32>
    %cst_3 = arith.constant 3.200000e+01 : f32
    %7 = vector.broadcast %cst_3 : f32 to vector<16x1xf32>
    %8 = arith.divf %6, %7 : vector<16x1xf32>
    %9 = vector.broadcast %8 : vector<16x1xf32> to vector<16x32xf32>
    %10 = arith.subf %4, %9 : vector<16x32xf32>
    %11 = arith.mulf %10, %10 : vector<16x32xf32>
    %cst_4 = arith.constant dense<0.000000e+00> : vector<16xf32>
    %12 = vector.multi_reduction <add>, %11, %cst_4 [1] : vector<16x32xf32> to vector<16xf32>
    %13 = vector.shape_cast %12 : vector<16xf32> to vector<16x1xf32>
    %cst_5 = arith.constant 3.200000e+01 : f32
    %14 = vector.broadcast %cst_5 : f32 to vector<16x1xf32>
    %15 = arith.divf %13, %14 : vector<16x1xf32>
    %16 = vector.broadcast %8 : vector<16x1xf32> to vector<16x32xf32>
    %17 = arith.subf %4, %16 : vector<16x32xf32>
    %cst_6 = arith.constant 9.99999974E-6 : f32
    %18 = vector.broadcast %cst_6 : f32 to vector<16x1xf32>
    %19 = arith.addf %15, %18 : vector<16x1xf32>
    %20 = math.rsqrt %19 : vector<16x1xf32>
    %21 = vector.broadcast %20 : vector<16x1xf32> to vector<16x32xf32>
    %22 = arith.mulf %17, %21 : vector<16x32xf32>
    %c0_7 = arith.constant 0 : index
    %c0_8 = arith.constant 0 : index
    %c0_9 = arith.constant 0 : index
    %23 = vector.load %arg3[%c0_7, %c0_8, %c0_9] : memref<1x1x32xf32, #tpu.memory_space<vmem>>, vector<1x1x32xf32>
    %24 = vector.shape_cast %23 : vector<1x1x32xf32> to vector<1x32xf32>
    %25 = vector.broadcast %24 : vector<1x32xf32> to vector<16x32xf32>
    %26 = arith.mulf %22, %25 : vector<16x32xf32>
    %c0_10 = arith.constant 0 : index
    %c0_11 = arith.constant 0 : index
    %c0_12 = arith.constant 0 : index
    %27 = vector.load %arg4[%c0_10, %c0_11, %c0_12] : memref<1x1x32xf32, #tpu.memory_space<vmem>>, vector<1x1x32xf32>
    %28 = vector.shape_cast %27 : vector<1x1x32xf32> to vector<1x32xf32>
    %29 = vector.broadcast %28 : vector<1x32xf32> to vector<16x32xf32>
    %30 = arith.addf %26, %29 : vector<16x32xf32>
    %c0_13 = arith.constant 0 : index
    %c0_14 = arith.constant 0 : index
    %c0_15 = arith.constant 0 : index
    %31 = vector.load %arg5[%c0_13, %c0_14, %c0_15] : memref<1x32x96xf32, #tpu.memory_space<vmem>>, vector<1x32x96xf32>
    %32 = vector.shape_cast %31 : vector<1x32x96xf32> to vector<32x96xf32>
    %cst_16 = arith.constant dense<0.000000e+00> : vector<16x96xf32>
    %33 = tpu.matmul %30, %32, %cst_16 {dimension_numbers = #tpu.dot_dimension_numbers<[1], [0], [0], [1], [0, 0, 1, 1], [], []>, precision = #tpu.contract_precision<fp32>} : vector<16x32xf32>, vector<32x96xf32>, vector<16x96xf32> -> vector<16x96xf32>
    %c0_17 = arith.constant 0 : index
    %c0_18 = arith.constant 0 : index
    %c0_19 = arith.constant 0 : index
    %34 = vector.load %arg6[%c0_17, %c0_18, %c0_19] : memref<1x1x96xf32, #tpu.memory_space<vmem>>, vector<1x1x96xf32>
    %35 = vector.shape_cast %34 : vector<1x1x96xf32> to vector<1x96xf32>
    %36 = vector.broadcast %35 : vector<1x96xf32> to vector<16x96xf32>
    %37 = arith.addf %33, %36 : vector<16x96xf32>
    %38 = vector.extract_strided_slice %37 {offsets = [0, 0], sizes = [16, 8], strides = [1, 1]} : vector<16x96xf32> to vector<16x8xf32>
    %39 = vector.extract_strided_slice %37 {offsets = [0, 8], sizes = [16, 8], strides = [1, 1]} : vector<16x96xf32> to vector<16x8xf32>
    %40 = vector.extract_strided_slice %37 {offsets = [0, 16], sizes = [16, 8], strides = [1, 1]} : vector<16x96xf32> to vector<16x8xf32>
    %41 = vector.extract_strided_slice %37 {offsets = [0, 24], sizes = [16, 8], strides = [1, 1]} : vector<16x96xf32> to vector<16x8xf32>
    %42 = vector.shape_cast %38 : vector<16x8xf32> to vector<1x16x8xf32>
    %43 = vector.shape_cast %39 : vector<16x8xf32> to vector<1x16x8xf32>
    %44 = vector.shape_cast %40 : vector<16x8xf32> to vector<1x16x8xf32>
    %45 = vector.shape_cast %41 : vector<16x8xf32> to vector<1x16x8xf32>
    %46 = tpu.concatenate %42, %43, %44, %45 in 0 : vector<1x16x8xf32>, vector<1x16x8xf32>, vector<1x16x8xf32>, vector<1x16x8xf32> -> vector<4x16x8xf32>
    %47 = vector.extract_strided_slice %37 {offsets = [0, 32], sizes = [16, 8], strides = [1, 1]} : vector<16x96xf32> to vector<16x8xf32>
    %48 = vector.extract_strided_slice %37 {offsets = [0, 40], sizes = [16, 8], strides = [1, 1]} : vector<16x96xf32> to vector<16x8xf32>
    %49 = vector.extract_strided_slice %37 {offsets = [0, 48], sizes = [16, 8], strides = [1, 1]} : vector<16x96xf32> to vector<16x8xf32>
    %50 = vector.extract_strided_slice %37 {offsets = [0, 56], sizes = [16, 8], strides = [1, 1]} : vector<16x96xf32> to vector<16x8xf32>
    %51 = vector.shape_cast %47 : vector<16x8xf32> to vector<1x16x8xf32>
    %52 = vector.shape_cast %48 : vector<16x8xf32> to vector<1x16x8xf32>
    %53 = vector.shape_cast %49 : vector<16x8xf32> to vector<1x16x8xf32>
    %54 = vector.shape_cast %50 : vector<16x8xf32> to vector<1x16x8xf32>
    %55 = tpu.concatenate %51, %52, %53, %54 in 0 : vector<1x16x8xf32>, vector<1x16x8xf32>, vector<1x16x8xf32>, vector<1x16x8xf32> -> vector<4x16x8xf32>
    %56 = vector.extract_strided_slice %37 {offsets = [0, 64], sizes = [16, 8], strides = [1, 1]} : vector<16x96xf32> to vector<16x8xf32>
    %57 = vector.extract_strided_slice %37 {offsets = [0, 72], sizes = [16, 8], strides = [1, 1]} : vector<16x96xf32> to vector<16x8xf32>
    %58 = vector.extract_strided_slice %37 {offsets = [0, 80], sizes = [16, 8], strides = [1, 1]} : vector<16x96xf32> to vector<16x8xf32>
    %59 = vector.extract_strided_slice %37 {offsets = [0, 88], sizes = [16, 8], strides = [1, 1]} : vector<16x96xf32> to vector<16x8xf32>
    %60 = vector.shape_cast %56 : vector<16x8xf32> to vector<1x16x8xf32>
    %61 = vector.shape_cast %57 : vector<16x8xf32> to vector<1x16x8xf32>
    %62 = vector.shape_cast %58 : vector<16x8xf32> to vector<1x16x8xf32>
    %63 = vector.shape_cast %59 : vector<16x8xf32> to vector<1x16x8xf32>
    %64 = tpu.concatenate %60, %61, %62, %63 in 0 : vector<1x16x8xf32>, vector<1x16x8xf32>, vector<1x16x8xf32>, vector<1x16x8xf32> -> vector<4x16x8xf32>
    "tpu.trace_start"() <{level = 10 : i32, message = "hqd,hkd->hqk"}> : () -> ()
    %cst_20 = arith.constant dense<0.000000e+00> : vector<4x16x16xf32>
    %65 = tpu.matmul %46, %55, %cst_20 {dimension_numbers = #tpu.dot_dimension_numbers<[2], [2], [1], [1], [0, 0, 0, 1, 1, 1], [0], [0]>, precision = #tpu.contract_precision<fp32>} : vector<4x16x8xf32>, vector<4x16x8xf32>, vector<4x16x16xf32> -> vector<4x16x16xf32>
    "tpu.trace_stop"() : () -> ()
    %cst_21 = arith.constant 0.353553385 : f32
    %66 = vector.broadcast %cst_21 : f32 to vector<4x16x16xf32>
    %67 = arith.mulf %65, %66 : vector<4x16x16xf32>
    %cst_22 = arith.constant dense<0xFF800000> : vector<4x16xf32>
    %68 = vector.multi_reduction <maximumf>, %67, %cst_22 [2] : vector<4x16x16xf32> to vector<4x16xf32>
    %69 = vector.shape_cast %68 : vector<4x16xf32> to vector<4x16x1xf32>
    %70 = vector.broadcast %69 : vector<4x16x1xf32> to vector<4x16x16xf32>
    %71 = arith.subf %67, %70 : vector<4x16x16xf32>
    %72 = math.exp %71 : vector<4x16x16xf32>
    %cst_23 = arith.constant dense<0.000000e+00> : vector<4x16xf32>
    %73 = vector.multi_reduction <add>, %72, %cst_23 [2] : vector<4x16x16xf32> to vector<4x16xf32>
    %74 = vector.shape_cast %73 : vector<4x16xf32> to vector<4x16x1xf32>
    %75 = tpu.reciprocal %74 {approx = true} : vector<4x16x1xf32> -> vector<4x16x1xf32>
    %76 = vector.broadcast %75 : vector<4x16x1xf32> to vector<4x16x16xf32>
    %77 = arith.mulf %72, %76 : vector<4x16x16xf32>
    "tpu.trace_start"() <{level = 10 : i32, message = "hqk,hkd->hqd"}> : () -> ()
    %cst_24 = arith.constant dense<0.000000e+00> : vector<4x16x8xf32>
    %78 = tpu.matmul %77, %64, %cst_24 {dimension_numbers = #tpu.dot_dimension_numbers<[2], [1], [1], [2], [0, 0, 0, 1, 1, 2], [0], [0]>, precision = #tpu.contract_precision<fp32>} : vector<4x16x16xf32>, vector<4x16x8xf32>, vector<4x16x8xf32> -> vector<4x16x8xf32>
    "tpu.trace_stop"() : () -> ()
    %79 = vector.extract_strided_slice %78 {offsets = [0, 0, 0], sizes = [1, 16, 8], strides = [1, 1, 1]} : vector<4x16x8xf32> to vector<1x16x8xf32>
    %80 = vector.shape_cast %79 : vector<1x16x8xf32> to vector<16x8xf32>
    %81 = vector.extract_strided_slice %78 {offsets = [1, 0, 0], sizes = [1, 16, 8], strides = [1, 1, 1]} : vector<4x16x8xf32> to vector<1x16x8xf32>
    %82 = vector.shape_cast %81 : vector<1x16x8xf32> to vector<16x8xf32>
    %83 = vector.extract_strided_slice %78 {offsets = [2, 0, 0], sizes = [1, 16, 8], strides = [1, 1, 1]} : vector<4x16x8xf32> to vector<1x16x8xf32>
    %84 = vector.shape_cast %83 : vector<1x16x8xf32> to vector<16x8xf32>
    %85 = vector.extract_strided_slice %78 {offsets = [3, 0, 0], sizes = [1, 16, 8], strides = [1, 1, 1]} : vector<4x16x8xf32> to vector<1x16x8xf32>
    %86 = vector.shape_cast %85 : vector<1x16x8xf32> to vector<16x8xf32>
    %87 = tpu.concatenate %80, %82, %84, %86 in 1 : vector<16x8xf32>, vector<16x8xf32>, vector<16x8xf32>, vector<16x8xf32> -> vector<16x32xf32>
    %c0_25 = arith.constant 0 : index
    %c0_26 = arith.constant 0 : index
    %c0_27 = arith.constant 0 : index
    %88 = vector.load %arg7[%c0_25, %c0_26, %c0_27] : memref<1x32x32xf32, #tpu.memory_space<vmem>>, vector<1x32x32xf32>
    %89 = vector.shape_cast %88 : vector<1x32x32xf32> to vector<32x32xf32>
    %cst_28 = arith.constant dense<0.000000e+00> : vector<16x32xf32>
    %90 = tpu.matmul %87, %89, %cst_28 {dimension_numbers = #tpu.dot_dimension_numbers<[1], [0], [0], [1], [0, 0, 1, 1], [], []>, precision = #tpu.contract_precision<fp32>} : vector<16x32xf32>, vector<32x32xf32>, vector<16x32xf32> -> vector<16x32xf32>
    %c0_29 = arith.constant 0 : index
    %c0_30 = arith.constant 0 : index
    %c0_31 = arith.constant 0 : index
    %91 = vector.load %arg8[%c0_29, %c0_30, %c0_31] : memref<1x1x32xf32, #tpu.memory_space<vmem>>, vector<1x1x32xf32>
    %92 = vector.shape_cast %91 : vector<1x1x32xf32> to vector<1x32xf32>
    %93 = vector.broadcast %92 : vector<1x32xf32> to vector<16x32xf32>
    %94 = arith.addf %90, %93 : vector<16x32xf32>
    %95 = arith.addf %4, %94 : vector<16x32xf32>
    %cst_32 = arith.constant dense<0.000000e+00> : vector<16xf32>
    %96 = vector.multi_reduction <add>, %95, %cst_32 [1] : vector<16x32xf32> to vector<16xf32>
    %97 = vector.shape_cast %96 : vector<16xf32> to vector<16x1xf32>
    %cst_33 = arith.constant 3.200000e+01 : f32
    %98 = vector.broadcast %cst_33 : f32 to vector<16x1xf32>
    %99 = arith.divf %97, %98 : vector<16x1xf32>
    %100 = vector.broadcast %99 : vector<16x1xf32> to vector<16x32xf32>
    %101 = arith.subf %95, %100 : vector<16x32xf32>
    %102 = arith.mulf %101, %101 : vector<16x32xf32>
    %cst_34 = arith.constant dense<0.000000e+00> : vector<16xf32>
    %103 = vector.multi_reduction <add>, %102, %cst_34 [1] : vector<16x32xf32> to vector<16xf32>
    %104 = vector.shape_cast %103 : vector<16xf32> to vector<16x1xf32>
    %cst_35 = arith.constant 3.200000e+01 : f32
    %105 = vector.broadcast %cst_35 : f32 to vector<16x1xf32>
    %106 = arith.divf %104, %105 : vector<16x1xf32>
    %107 = vector.broadcast %99 : vector<16x1xf32> to vector<16x32xf32>
    %108 = arith.subf %95, %107 : vector<16x32xf32>
    %cst_36 = arith.constant 9.99999974E-6 : f32
    %109 = vector.broadcast %cst_36 : f32 to vector<16x1xf32>
    %110 = arith.addf %106, %109 : vector<16x1xf32>
    %111 = math.rsqrt %110 : vector<16x1xf32>
    %112 = vector.broadcast %111 : vector<16x1xf32> to vector<16x32xf32>
    %113 = arith.mulf %108, %112 : vector<16x32xf32>
    %c0_37 = arith.constant 0 : index
    %c0_38 = arith.constant 0 : index
    %c0_39 = arith.constant 0 : index
    %114 = vector.load %arg9[%c0_37, %c0_38, %c0_39] : memref<1x1x32xf32, #tpu.memory_space<vmem>>, vector<1x1x32xf32>
    %115 = vector.shape_cast %114 : vector<1x1x32xf32> to vector<1x32xf32>
    %116 = vector.broadcast %115 : vector<1x32xf32> to vector<16x32xf32>
    %117 = arith.mulf %113, %116 : vector<16x32xf32>
    %c0_40 = arith.constant 0 : index
    %c0_41 = arith.constant 0 : index
    %c0_42 = arith.constant 0 : index
    %118 = vector.load %arg10[%c0_40, %c0_41, %c0_42] : memref<1x1x32xf32, #tpu.memory_space<vmem>>, vector<1x1x32xf32>
    %119 = vector.shape_cast %118 : vector<1x1x32xf32> to vector<1x32xf32>
    %120 = vector.broadcast %119 : vector<1x32xf32> to vector<16x32xf32>
    %121 = arith.addf %117, %120 : vector<16x32xf32>
    %c0_43 = arith.constant 0 : index
    %c0_44 = arith.constant 0 : index
    %c0_45 = arith.constant 0 : index
    %122 = vector.load %arg11[%c0_43, %c0_44, %c0_45] : memref<1x32x64xf32, #tpu.memory_space<vmem>>, vector<1x32x64xf32>
    %123 = vector.shape_cast %122 : vector<1x32x64xf32> to vector<32x64xf32>
    %cst_46 = arith.constant dense<0.000000e+00> : vector<16x64xf32>
    %124 = tpu.matmul %121, %123, %cst_46 {dimension_numbers = #tpu.dot_dimension_numbers<[1], [0], [0], [1], [0, 0, 1, 1], [], []>, precision = #tpu.contract_precision<fp32>} : vector<16x32xf32>, vector<32x64xf32>, vector<16x64xf32> -> vector<16x64xf32>
    %c0_47 = arith.constant 0 : index
    %c0_48 = arith.constant 0 : index
    %c0_49 = arith.constant 0 : index
    %125 = vector.load %arg12[%c0_47, %c0_48, %c0_49] : memref<1x1x64xf32, #tpu.memory_space<vmem>>, vector<1x1x64xf32>
    %126 = vector.shape_cast %125 : vector<1x1x64xf32> to vector<1x64xf32>
    %127 = vector.broadcast %126 : vector<1x64xf32> to vector<16x64xf32>
    %128 = arith.addf %124, %127 : vector<16x64xf32>
    %cst_50 = arith.constant 5.000000e-01 : f32
    %129 = vector.broadcast %cst_50 : f32 to vector<16x64xf32>
    %130 = arith.mulf %129, %128 : vector<16x64xf32>
    %cst_51 = arith.constant 4.475000e-02 : f32
    %131 = vector.broadcast %cst_51 : f32 to vector<16x64xf32>
    %132 = arith.mulf %131, %128 : vector<16x64xf32>
    %133 = arith.mulf %132, %128 : vector<16x64xf32>
    %134 = arith.mulf %133, %128 : vector<16x64xf32>
    %135 = arith.addf %128, %134 : vector<16x64xf32>
    %cst_52 = arith.constant 0.797884583 : f32
    %136 = vector.broadcast %cst_52 : f32 to vector<16x64xf32>
    %137 = arith.mulf %136, %135 : vector<16x64xf32>
    %138 = math.tanh %137 : vector<16x64xf32>
    %cst_53 = arith.constant 1.000000e+00 : f32
    %139 = vector.broadcast %cst_53 : f32 to vector<16x64xf32>
    %140 = arith.addf %139, %138 : vector<16x64xf32>
    %141 = arith.mulf %130, %140 : vector<16x64xf32>
    %c0_54 = arith.constant 0 : index
    %c0_55 = arith.constant 0 : index
    %c0_56 = arith.constant 0 : index
    %142 = vector.load %arg13[%c0_54, %c0_55, %c0_56] : memref<1x64x32xf32, #tpu.memory_space<vmem>>, vector<1x64x32xf32>
    %143 = vector.shape_cast %142 : vector<1x64x32xf32> to vector<64x32xf32>
    %cst_57 = arith.constant dense<0.000000e+00> : vector<16x32xf32>
    %144 = tpu.matmul %141, %143, %cst_57 {dimension_numbers = #tpu.dot_dimension_numbers<[1], [0], [0], [1], [0, 0, 1, 1], [], []>, precision = #tpu.contract_precision<fp32>} : vector<16x64xf32>, vector<64x32xf32>, vector<16x32xf32> -> vector<16x32xf32>
    %c0_58 = arith.constant 0 : index
    %c0_59 = arith.constant 0 : index
    %c0_60 = arith.constant 0 : index
    %145 = vector.load %arg14[%c0_58, %c0_59, %c0_60] : memref<1x1x32xf32, #tpu.memory_space<vmem>>, vector<1x1x32xf32>
    %146 = vector.shape_cast %145 : vector<1x1x32xf32> to vector<1x32xf32>
    %147 = vector.broadcast %146 : vector<1x32xf32> to vector<16x32xf32>
    %148 = arith.addf %144, %147 : vector<16x32xf32>
    %149 = arith.addf %95, %148 : vector<16x32xf32>
    %c0_61 = arith.constant 0 : index
    %c0_62 = arith.constant 0 : index
    %c0_63 = arith.constant 0 : index
    %150 = vector.load %arg15[%c0_61, %c0_62, %c0_63] : memref<1x16x32xf32, #tpu.memory_space<vmem>>, vector<1x16x32xf32>
    %151 = vector.shape_cast %150 : vector<1x16x32xf32> to vector<16x32xf32>
    %152 = vector.shape_cast %149 : vector<16x32xf32> to vector<1x16x32xf32>
    tpu.vector_store %arg15[%c0_61, %c0_62, %c0_63], %152 {strides = array<i32>} : memref<1x16x32xf32, #tpu.memory_space<vmem>>, vector<1x16x32xf32>,
    return
  }
  func.func @transform_0(%arg0: i32, %arg1: i32) -> (i32, i32, i32) {
    %c0_i32 = arith.constant 0 : i32
    %c0_i32_0 = arith.constant 0 : i32
    %c0_i32_1 = arith.constant 0 : i32
    return %arg0, %c0_i32, %c0_i32_0 : i32, i32, i32
  }
  func.func @transform_1(%arg0: i32, %arg1: i32) -> (i32, i32, i32) {
    %c0_i32 = arith.constant 0 : i32
    %c0_i32_0 = arith.constant 0 : i32
    %c0_i32_1 = arith.constant 0 : i32
    return %arg1, %c0_i32, %c0_i32_0 : i32, i32, i32
  }
  func.func @transform_2(%arg0: i32, %arg1: i32) -> (i32, i32, i32) {
    %c0_i32 = arith.constant 0 : i32
    %c0_i32_0 = arith.constant 0 : i32
    %c0_i32_1 = arith.constant 0 : i32
    return %arg1, %c0_i32, %c0_i32_0 : i32, i32, i32
  }
  func.func @transform_3(%arg0: i32, %arg1: i32) -> (i32, i32, i32) {
    %c0_i32 = arith.constant 0 : i32
    %c0_i32_0 = arith.constant 0 : i32
    %c0_i32_1 = arith.constant 0 : i32
    return %arg1, %c0_i32, %c0_i32_0 : i32, i32, i32
  }
  func.func @transform_4(%arg0: i32, %arg1: i32) -> (i32, i32, i32) {
    %c0_i32 = arith.constant 0 : i32
    %c0_i32_0 = arith.constant 0 : i32
    %c0_i32_1 = arith.constant 0 : i32
    return %arg1, %c0_i32, %c0_i32_0 : i32, i32, i32
  }
  func.func @transform_5(%arg0: i32, %arg1: i32) -> (i32, i32, i32) {
    %c0_i32 = arith.constant 0 : i32
    %c0_i32_0 = arith.constant 0 : i32
    %c0_i32_1 = arith.constant 0 : i32
    return %arg1, %c0_i32, %c0_i32_0 : i32, i32, i32
  }
  func.func @transform_6(%arg0: i32, %arg1: i32) -> (i32, i32, i32) {
    %c0_i32 = arith.constant 0 : i32
    %c0_i32_0 = arith.constant 0 : i32
    %c0_i32_1 = arith.constant 0 : i32
    return %arg1, %c0_i32, %c0_i32_0 : i32, i32, i32
  }
  func.func @transform_7(%arg0: i32, %arg1: i32) -> (i32, i32, i32) {
    %c0_i32 = arith.constant 0 : i32
    %c0_i32_0 = arith.constant 0 : i32
    %c0_i32_1 = arith.constant 0 : i32
    return %arg1, %c0_i32, %c0_i32_0 : i32, i32, i32
  }
  func.func @transform_8(%arg0: i32, %arg1: i32) -> (i32, i32, i32) {
    %c0_i32 = arith.constant 0 : i32
    %c0_i32_0 = arith.constant 0 : i32
    %c0_i32_1 = arith.constant 0 : i32
    return %arg1, %c0_i32, %c0_i32_0 : i32, i32, i32
  }
  func.func @transform_9(%arg0: i32, %arg1: i32) -> (i32, i32, i32) {
    %c0_i32 = arith.constant 0 : i32
    %c0_i32_0 = arith.constant 0 : i32
    %c0_i32_1 = arith.constant 0 : i32
    return %arg1, %c0_i32, %c0_i32_0 : i32, i32, i32
  }
  func.func @transform_10(%arg0: i32, %arg1: i32) -> (i32, i32, i32) {
    %c0_i32 = arith.constant 0 : i32
    %c0_i32_0 = arith.constant 0 : i32
    %c0_i32_1 = arith.constant 0 : i32
    return %arg1, %c0_i32, %c0_i32_0 : i32, i32, i32
  }
  func.func @transform_11(%arg0: i32, %arg1: i32) -> (i32, i32, i32) {
    %c0_i32 = arith.constant 0 : i32
    %c0_i32_0 = arith.constant 0 : i32
    %c0_i32_1 = arith.constant 0 : i32
    return %arg1, %c0_i32, %c0_i32_0 : i32, i32, i32
  }
  func.func @transform_12(%arg0: i32, %arg1: i32) -> (i32, i32, i32) {
    %c0_i32 = arith.constant 0 : i32
    %c0_i32_0 = arith.constant 0 : i32
    %c0_i32_1 = arith.constant 0 : i32
    return %arg1, %c0_i32, %c0_i32_0 : i32, i32, i32
  }
  func.func @transform_13(%arg0: i32, %arg1: i32) -> (i32, i32, i32) {
    %c0_i32 = arith.constant 0 : i32
    %c0_i32_0 = arith.constant 0 : i32
    %c0_i32_1 = arith.constant 0 : i32
    return %arg0, %c0_i32, %c0_i32_0 : i32, i32, i32
  }
}

</mosaic_0001>

<bundles_post_ra>
// kernel: encoder_forward.1
= control target key start
LH: loop header
LB: loop body
LE: loop exit
PB: predicated region body
PF: predicated region fallthrough
CT: control target
= control target key end

     0   :  { %s10101_s0 = inlined_call_operand.vmem [shape: f32[2,16,32], index: 0, kind: input, shape index: {}]   ;;  %s10102_s1 = inlined_call_operand.vmem [shape: f32[2,1,32], index: 1, kind: input, shape index: {}]   ;;  %s10103_s2 = inlined_call_operand.vmem [shape: f32[2,1,32], index: 2, kind: input, shape index: {}]   ;;  %s10104_s3 = inlined_call_operand.vmem [shape: f32[2,32,96], index: 3, kind: input, shape index: {}]   ;;  %s10105_s4 = inlined_call_operand.vmem [shape: f32[2,1,96], index: 4, kind: input, shape index: {}]   ;;  %s10106_s5 = inlined_call_operand.vmem [shape: f32[2,32,32], index: 5, kind: input, shape index: {}]   ;;  %s10107_s6 = inlined_call_operand.vmem [shape: f32[2,1,32], index: 6, kind: input, shape index: {}]   ;;  %s10108_s7 = inlined_call_operand.vmem [shape: f32[2,1,32], index: 7, kind: input, shape index: {}]   ;;  %s10109_s8 = inlined_call_operand.vmem [shape: f32[2,1,32], index: 8, kind: input, shape index: {}]   ;;  %s10110_s9 = inlined_call_operand.vmem [shape: f32[2,32,64], index: 9, kind: input, shape index: {}]   ;;  %s10111_s10 = inlined_call_operand.vmem [shape: f32[2,1,64], index: 10, kind: input, shape index: {}]   ;;  %s10112_s11 = inlined_call_operand.vmem [shape: f32[2,64,32], index: 11, kind: input, shape index: {}]   ;;  %s10113_s12 = inlined_call_operand.vmem [shape: f32[2,1,32], index: 12, kind: input, shape index: {}]   ;;  %s10114_s13 = inlined_call_operand.hbm [shape: f32[2,16,32], index: 13, kind: output, shape index: {}]  }
   0x1   :  { %10130 = sst [smem:[#allocation18_spill]] %s10101_s0 }
   0x2   :  { %10131 = sst [smem:[#allocation19_spill]] %s10104_s3 }
   0x3   :  { %10132 = sst [smem:[#allocation20_spill]] %s10106_s5 }
   0x4   :  { %10133 = sst [smem:[#allocation21_spill]] %s10108_s7 }
   0x5   :  { %10134 = sst [smem:[#allocation22_spill]] %s10112_s11 }
   0x6   :  { %10135 = sst [smem:[#allocation23_spill]] %s10114_s13 }
   0x7   :  { %18 = vsyncpa [#allocation3], 0 }
   0x8   :  { %20 = vsyncpa [#allocation3 + $0x1], 0  ;;  %s9373_s25 = smov 0   ;;  %s9375_s26 = smov 0  }
   0x9   :  { %s9377_s27 = smov 0   ;;  %s9379_s28 = smov 0  }
   0xa   :  { %s9381_s29 = smov 0   ;;  %s9383_s30 = smov 0  }
   0xb   :  { %s9385_s14 = smov 0   ;;  %s9387_s15 = smov 0  }
   0xc LB: > { %10136 = sst [smem:[#allocation5_spill]] %s9263_s25  ;;  %s7467_s16 = sadd.s32 4294967295, %s9291_s15   ;;  %s9291_s15 = sphi %s9387_s15, %s26_s15   ;;  %s9287_s14 = sphi %s9385_s14, %s10177_s14   ;;  %s9283_s30 = sphi %s9383_s30, %s10176_s30   ;;  %s9279_s29 = sphi %s9381_s29, %s10175_s29   ;;  %s9275_s28 = sphi %s9379_s28, %s10174_s28   ;;  %s9271_s27 = sphi %s9377_s27, %s10173_s27   ;;  %s9267_s26 = sphi %s9375_s26, %s10172_s26   ;;  %s9263_s25 = sphi %s9373_s25, %s10171_s25  }
   0xd   : > { %10137 = sst [smem:[#allocation6_spill]] %s9267_s26  ;;  %s7468_s17 = sadd.s32 4294967294, %s9291_s15  }
   0xe   : > { %10138 = sst [smem:[#allocation7_spill]] %s9271_s27  ;;  %s35_s18 = sadd.s32 1, %s9283_s30 }
   0xf   : > { %10139 = sst [smem:[#allocation8_spill]] %s9275_s28  ;;  %p36_p0 = scmp.ge.s32.totalorder %s35_s18, 2 }
  0x10   : > { %10140 = sst [smem:[#allocation9_spill]] %s9279_s29  ;;  %s38_s19 = sadd.s32 1, %s9287_s14 }
  0x11   : > { %10141 = sst [smem:[#allocation10_spill]] %s9283_s30  ;;  %p393_p1 = scmp.ne.s32.totalorder %s9271_s27, %s9267_s26 }
  0x12   : > { %10142 = sst [smem:[#allocation11_spill]] %s9287_s14  ;;  %p394_p2 = scmp.eq.s32.totalorder %s7467_s16, 3 }
  0x13   : > { %10143 = sst [smem:[#allocation12_spill]] %s9291_s15  ;;  %s10179_s18 = smov (%p36_p0, %s35_s18), 0 }
  0x14   : > { %10144 = sst [smem:[#allocation13_spill]] %s10179_s18  ;;  %s10181_s19 = smov (!%p36_p0, %s38_s19), %s9287_s14 }
  0x15   : > { %p9422_p3 = por %p394_p2, %p393_p1  ;;  %p399_p4 = scmp.ne.s32.totalorder %s9267_s26, %s9263_s25 }
  0x16   : > { %p40_p5 = scmp.ge.s32.totalorder %s10181_s19, 2  ;;  %p400_p6 = scmp.eq.s32.totalorder %s7468_s17, 3 }
  0x17   : > { %s10145_s20 = scalar_select %p9422_p3, 1, 0 }
  0x18   : > { %p7471_p7 = scmp.ge.s32.totalorder %s9291_s15, 1  ;;  %p506_p8 = scmp.lt.s32.totalorder %s9291_s15, 5 }
  0x19   : > { %10146 = sst [smem:[#allocation14_spill]] %s10145_s20  ;;  %s10183_s19 = smov (%p40_p5, %s10181_s19), 0 }
  0x1a   : > { %10147 = sst [smem:[#allocation15_spill]] %s10183_s19  ;;  %p9432_p9 = por %p400_p6, %p399_p4 }
  0x1b   : > { %p507_p10 = pnand %p7471_p7, %p506_p8  ;;  %s380_s22 = ssub.s32 %s9287_s14, %s10183_s19 }
  0x1c   : > { %s10148_s21 = scalar_select %p9432_p9, 1, 0 }
  0x1d   : > { %s383_s23 = sadd.s32 1, %s9271_s27  ;;  %p381_p11 = scmp.eq.s32.totalorder %s380_s22, 0 }
  0x1e   : > { %10149 = sst [smem:[#allocation16_spill]] %s10148_s21  ;;  %510 = sbr.rel (%p507_p10) target bundleno = 3048 (0xbe8), region = 72 }
  0x1f   : > { %s9440_s24 = scalar_select %p381_p11, %s9271_s27, %s383_s23  }
  0x20   : > { %s10118_s16 = sand.u32 (!%p507_p10), 1, %s9267_s26   ;;  %p594_p12 = scmp.lt.s32.totalorder (!%p507_p10), %s9279_s29, 1 }
  0x21   : > { %10150 = sst [smem:[#allocation17_spill]] %s9440_s24  ;;  %s7472_s17 = sshll.u32 (!%p507_p10), %s10118_s16, 4 }
  0x22   : > { %p599_p13 = scmp.lt.s32.totalorder (!%p507_p10), %s9275_s28, 1  ;;  %s10151_s0 = sld [smem:[#allocation18_spill]] (!%p507_p10) }
  0x23   : > { %s10152_s3 = sld [smem:[#allocation19_spill]] (!%p507_p10)  ;;  %s10153_s5 = sld [smem:[#allocation20_spill]] (!%p507_p10) }
  0x24   : > { %s10155_s27 = sld [smem:[#allocation22_spill]] (!%p507_p10)  ;;  %s9508_s26 = scalar_lea.vmem (!%p507_p10), [#allocation2], %s7472_s17 }
  0x25   : > { %s595_s18 = scalar_select %p594_p12, %s9279_s29, 1 }
  0x26   : > { %s9449_s30 = scalar_select %p599_p13, %s9275_s28, 1 }
  0x27   : > { %s7497_s22 = sshll.u32 %s595_s18, 4  ;;  %s10156_s20 = sld [smem:[#allocation8_spill]] }
  0x28   : > { %s598_s14 = scalar_lea.vmem %s10151_s0, %s7497_s22  ;;  %s7498_s13 = sshll.u32 %s9449_s30, 5 }
  0x29   : > { %s9466_s29 = scalar_lea.vmem %s10152_s3, %s7498_s13  ;;  %s9475_s23 = scalar_lea.vmem %s10153_s5, %s7498_s13 }
  0x2a   : > { %s626_s0 = scalar_lea.vmem %s10109_s8, %s9449_s30  ;;  %s9492_s18 = scalar_lea.vmem %s10110_s9, %s7498_s13 }
  0x2b   : > { %s634_s11 = scalar_lea.vmem %s10111_s10, %s9449_s30  ;;  %s7501_s5 = sshll.u32 %s9449_s30, 6 }
  0x2c   : > { %s642_s25 = scalar_lea.vmem %s10113_s12, %s9449_s30  ;;  %s9506_s7 = scalar_lea.vmem %s10155_s27, %s7501_s5 }
  0x2d   : > { %p7483_p0 = scmp.ne.s32.totalorder %s10156_s20, 0 }
  0x2e   : > { %v647_v0 = vld [vmem:[%s598_s14] sm:$0xff] (!%p7483_p0)  ;;  %vm649_vm0 = vcmask (!%p7483_p0), 261120   ;;  %v648_v1 = vld [vmem:[%s598_s14 + $0x8] sm:$0xff] (!%p7483_p0) }
  0x2f   : > { %646 = sbr.rel (%p7483_p0) target bundleno = 54 (0x36), region = 76  ;;  %650 = vst.msk [vmem:[%s9508_s26] sm:$0xff] (!%p7483_p0), %vm649_vm0, %v647_v0  ;;  %651 = vst.msk [vmem:[%s9508_s26 + $0x8] sm:$0xff] (!%p7483_p0), %vm649_vm0, %v648_v1 }
  0x36 PF: > { %v652_v2 = vld [vmem:[%s9508_s26] sm:$0xff]  ;;  %vm654_vm1 = vcmask 261120   ;;  %v653_v3 = vld [vmem:[%s9508_s26 + $0x8] sm:$0xff]  ;;  %s10157_s13 = scalar_lea.vmem %s10102_s1, %s9449_s30  ;;  %s10158_s14 = scalar_lea.vmem %s10103_s2, %s9449_s30  ;;  %vm1263_vm2 = vcmask 64512   ;;  %vm3324_vm3 = vcmask 130048   ;;  %vm5497_vm4 = vcmask 195584  }
  0x37   : > { %v655_v4 = vsel %vm654_vm1, %v652_v2, 0.0  ;;  %v658_v5 = vsel %vm654_vm1, %v653_v3, 0.0  ;;  %v700_v16 = vld [vmem:[%s9466_s29] sm:$0xff]  ;;  %v701_v17 = vld [vmem:[%s9466_s29 + $0x8] sm:$0xff]  ;;  %v702_v18 = vld [vmem:[%s9466_s29 + $0x10] sm:$0xff]  ;;  %s10159_s19 = scalar_lea.vmem %s10105_s4, %s9449_s30  ;;  %s9293_s22 = smov 120  }
  0x38   : > { %656 = vadd.xlane.f32.xlu0 %v655_v4  ;;  %v718_v19 = vand.u32 4294901760, %v700_v16  ;;  %v721_v20 = vand.u32 4294901760, %v701_v17  ;;  %v703_v21 = vld [vmem:[%s9466_s29 + $0x18] sm:$0xff]  ;;  %v724_v22 = vand.u32 4294901760, %v702_v18  ;;  %v7484_v55 = vld [vmem:[%s10157_s13] ss:$0 sm:$0xff]  ;;  %s10160_s27 = scalar_lea.vmem %s10107_s6, %s9449_s30 }
  0x39   : > { %v727_v23 = vand.u32 4294901760, %v703_v21  ;;  %v7485_v57 = vld [vmem:[%s10158_s14] ss:$0 sm:$0xff]  ;;  %s9294_s24 = smov 96   ;;  %s9295_s16 = smov 112   ;;  %vm6669_vm5 = vcmask 523264  }
  0x3a   : > { %v9523_v24 = vpack.c.bf16 %v721_v20, %v718_v19  ;;  %v808_v26 = vsub.f32 %v700_v16, %v718_v19  ;;  %v815_v27 = vsub.f32 %v701_v17, %v721_v20  ;;  %v822_v32 = vsub.f32 %v702_v18, %v724_v22  ;;  %s9296_s15 = smov 104   ;;  %s9297_s21 = smov 64  }
  0x3b   : > { %v9525_v25 = vpack.c.bf16 %v727_v23, %v724_v22  ;;  %v829_v33 = vsub.f32 %v703_v21, %v727_v23  ;;  %s9298_s20 = smov 8   ;;  %s9299_s3 = smov 16  }
  0x3c   : > { %659 = vadd.xlane.f32.xlu0 %v658_v5  ;;  %8512 = vmatprep.subr.bf16.mxu0 %v9523_v24  ;;  %v809_v28 = vand.u32 4294901760, %v808_v26  ;;  %v816_v29 = vand.u32 4294901760, %v815_v27  ;;  %v823_v36 = vand.u32 4294901760, %v822_v32  ;;  %v8527_v44 = vpack.c.bf16 %v815_v27, %v808_v26  ;;  %s10161_s14 = sld [smem:[#allocation21_spill]]  ;;  %s10166_s13 = sld [smem:[#allocation23_spill]] }
  0x3d   : > { %8514 = vmatpush3.bf16.msra.mxu0 %v9523_v24  ;;  %v830_v37 = vand.u32 4294901760, %v829_v33  ;;  %v8531_v45 = vpack.c.bf16 %v829_v33, %v822_v32  ;;  %s9301_s29 = smov [#allocation2]  }
  0x3e   : > { %8516 = vmatprep.subr.bf16.mxu0 %v9525_v25  ;;  %v810_v30 = vsub.f32 %v808_v26, %v809_v28  ;;  %v817_v31 = vsub.f32 %v815_v27, %v816_v29  ;;  %v824_v39 = vsub.f32 %v822_v32, %v823_v36  ;;  %v8543_v46 = vpack.c.bf16 %v816_v29, %v809_v28 }
  0x3f   : > { %v831_v40 = vsub.f32 %v829_v33, %v830_v37  ;;  %v8547_v47 = vpack.c.bf16 %v830_v37, %v823_v36 }
  0x40   : > { %v811_v34 = vand.u32 4294901760, %v810_v30  ;;  %v818_v35 = vand.u32 4294901760, %v817_v31  ;;  %v825_v41 = vand.u32 4294901760, %v824_v39 }
  0x41   : > { %8518 = vmatpush3.bf16.msra.mxu0 %v9525_v25  ;;  %v832_v42 = vand.u32 4294901760, %v831_v40 }
  0x42   : > { %v8519_v38 = vpack.c.bf16 %v818_v35, %v811_v34  ;;  %s10162_s17 = scalar_lea.vmem %s10161_s14, %s9449_s30  ;;  %s9201_s14 = sshll.u32 %s9301_s29, 4  ;;  %s9202_s14 = int_to_ptr.vmem [resolvable:$false] %s9201_s14 }
  0x43   : > { %v8523_v43 = vpack.c.bf16 %v832_v42, %v825_v41 }
  0x44   : > { %8520 = vmatprep.subr.bf16.mxu0 %v8519_v38 }
  0xc5   : > { %v657_v6 = vpop.xlane.xlu0 %656 }
  0xc6   : > { %v662_v7 = vmul.f32 0.03125, %v657_v6 }
  0xc8   : > { %v664_v8 = vsub.f32 %v652_v2, %v662_v7 }
  0xc9   : > { %v660_v9 = vpop.xlane.xlu0 %659 }
  0xca   : > { %v663_v10 = vmul.f32 0.03125, %v660_v9  ;;  %v666_v11 = vmul.f32 %v664_v8, %v664_v8 }
  0xcc   : > { %v665_v12 = vsub.f32 %v653_v3, %v663_v10  ;;  %v668_v13 = vsel %vm654_vm1, %v666_v11, 0.0 }
  0xcd   : > { %669 = vadd.xlane.f32.xlu1 %v668_v13 }
  0xce   : > { %v667_v14 = vmul.f32 %v665_v12, %v665_v12 }
  0xd0   : > { %v671_v15 = vsel %vm654_vm1, %v667_v14, 0.0 }
  0xd1   : > { %672 = vadd.xlane.f32.xlu1 %v671_v15 }
 0x15a   : > { %v670_v48 = vpop.xlane.xlu1 %669 }
 0x15b   : > { %v674_v49 = vmul.f32 0.03125, %v670_v48 }
 0x15d   : > { %v676_v50 = vadd.f32 1e-05, %v674_v49 }
 0x15e   : > { %v673_v51 = vpop.xlane.xlu1 %672 }
 0x15f   : > { %9151 = vrsqrt.f32 %v676_v50  ;;  %v675_v52 = vmul.f32 0.03125, %v673_v51 }
 0x161   : > { %v677_v53 = vadd.f32 1e-05, %v675_v52 }
 0x163   : > { %9153 = vrsqrt.f32 %v677_v53 }
 0x169   : > { %v9152_v54 = vpop.eup %9151 }
 0x16a   : > { %v680_v56 = vmul.f32 %v9152_v54, %v664_v8 }
 0x16c   : > { %v689_v58 = vmul.f32 %v7484_v55, %v680_v56 }
 0x16d   : > { %v9154_v59 = vpop.eup %9153 }
 0x16e   : > { %v681_v60 = vmul.f32 %v9154_v59, %v665_v12  ;;  %v698_v61 = vadd.f32 %v7485_v57, %v689_v58  ;;  %v7486_v12 = vld [vmem:[%s10159_s19] ss:$0 sm:$0xff] }
 0x170   : > { %v690_v62 = vmul.f32 %v7484_v55, %v681_v60  ;;  %v712_v63 = vsel %vm654_vm1, %v698_v61, 0 }
 0x171   : > { %v786_v0 = vand.u32 4294901760, %v712_v63 }
 0x172   : > { %v699_v1 = vadd.f32 %v7485_v57, %v690_v62 }
 0x173   : > { %v787_v2 = vsub.f32 %v712_v63, %v786_v0 }
 0x174   : > { %v715_v3 = vsel %vm654_vm1, %v699_v1, 0 }
 0x175   : > { %v788_v4 = vand.u32 4294901760, %v787_v2  ;;  %v796_v5 = vand.u32 4294901760, %v715_v3 }
 0x177   : > { %v789_v6 = vsub.f32 %v787_v2, %v788_v4  ;;  %v797_v7 = vsub.f32 %v715_v3, %v796_v5 }
 0x179   : > { %v790_v8 = vand.u32 4294901760, %v789_v6  ;;  %v798_v9 = vand.u32 4294901760, %v797_v7 }
 0x17b   : > { %7871 = vmatprep.mubr.f32.mxu0 %v790_v8  ;;  %v799_v10 = vsub.f32 %v797_v7, %v798_v9 }
 0x17d   : > { %v800_v11 = vand.u32 4294901760, %v799_v10 }
 0x17f   : > { %7872 = vmatmul.mubr.f32.vlgmr.msra.gmra.mrb[0].mxu0 %v800_v11 }
 0x180   : > { %8522 = vmatpush3.bf16.msra.mxu0 %v8519_v38  ;;  %7882 = vmatprep.mubr.f32.mxu0 %v786_v0 }
 0x181   : > { %8524 = vmatprep.subr.bf16.mxu0 %v8523_v43 }
 0x184   : > { %8526 = vmatpush3.bf16.msra.mxu0 %v8523_v43 }
 0x185   : > { %8528 = vmatprep.subr.bf16.mxu0 %v8527_v44 }
 0x187   : > { %7883 = vmatmul.mubr.f32.vlgmr.msra.gmra.mrb[0].mxu0 %v796_v5 }
 0x188   : > { %8530 = vmatpush3.bf16.msra.mxu0 %v8527_v44  ;;  %7893 = vmatprep.mubr.f32.mxu0 %v787_v2 }
 0x189   : > { %8532 = vmatprep.subr.bf16.mxu0 %v8531_v45 }
 0x18c   : > { %8534 = vmatpush3.bf16.msra.mxu0 %v8531_v45 }
 0x18d   : > { %8536 = vmatprep.subr.bf16.mxu0 %v9523_v24 }
 0x18f   : > { %7894 = vmatmul.mubr.f32.vlgmr.msra.gmra.mrb[0].mxu0 %v797_v7 }
 0x190   : > { %8538 = vmatpush3.bf16.msra.mxu0 %v9523_v24  ;;  %7904 = vmatprep.mubr.f32.mxu0 %v788_v4 }
 0x191   : > { %8540 = vmatprep.subr.bf16.mxu0 %v9525_v25 }
 0x194   : > { %8542 = vmatpush3.bf16.msra.mxu0 %v9525_v25 }
 0x195   : > { %8544 = vmatprep.subr.bf16.mxu0 %v8543_v46 }
 0x197   : > { %7905 = vmatmul.mubr.f32.vlgmr.msra.gmra.mrb[0].mxu0 %v798_v9 }
 0x198   : > { %8546 = vmatpush3.bf16.msra.mxu0 %v8543_v46  ;;  %7915 = vmatprep.mubr.f32.mxu0 %v786_v0 }
 0x199   : > { %8548 = vmatprep.subr.bf16.mxu0 %v8547_v47 }
 0x19c   : > { %8550 = vmatpush3.bf16.msra.mxu0 %v8547_v47 }
 0x19d   : > { %8552 = vmatprep.subr.bf16.mxu0 %v9523_v24 }
 0x19f   : > { %7916 = vmatmul.mubr.f32.vlgmr.msra.gmra.mrb[0].mxu0 %v796_v5 }
 0x1a0   : > { %8554 = vmatpush3.bf16.msra.mxu0 %v9523_v24  ;;  %7926 = vmatprep.mubr.f32.mxu0 %v786_v0 }
 0x1a1   : > { %8556 = vmatprep.subr.bf16.mxu0 %v9525_v25 }
 0x1a4   : > { %8558 = vmatpush3.bf16.msra.mxu0 %v9525_v25 }
 0x1a7   : > { %7927 = vmatmul.mubr.f32.vlgmr.msra.gmra.mrb[0].mxu0 %v796_v5 }
 0x27a   : > { %v7928_v13 = vpop.f32.mrb[0].mxu0 }
 0x27b   : > { %v9556_v14 = vadd.f32 %v7928_v13, %v7486_v12  ;;  %v1235_v15 = vpop.f32.mrb[1].mxu0 }
 0x27c   : > { %v9558_v16 = vadd.f32 %v7486_v12, %v1235_v15 }
 0x27d   : > { %1249 = vrot.lane.b32.xlu1 %v9556_v14, %s9293_s22  ;;  %v1266_v25 = vsel %vm1263_vm2, %v9556_v14, 0 }
 0x27e   : > { %1247 = vrot.lane.b32.xlu0 %v9558_v16, %s9293_s22  ;;  %v1264_v17 = vsel %vm1263_vm2, %v9558_v16, 0  ;;  %v1349_v29 = vand.u32 4294901760, %v1266_v25 }
 0x27f   : > { %v9564_v18 = vand.u32 4294901760, %v1264_v17 }
 0x280   : > { %v1350_v37 = vsub.f32 %v1266_v25, %v1349_v29 }
 0x281   : > { %1259 = vrot.lane.b32.xlu1 %v9558_v16, %s9294_s24  ;;  %v9569_v19 = vsub.f32 %v1264_v17, %v9564_v18 }
 0x282   : > { %1251 = vrot.lane.b32.xlu0 %v9558_v16, %s9295_s16  ;;  %v1351_v47 = vand.u32 4294901760, %v1350_v37 }
 0x283   : > { %v1341_v20 = vand.u32 4294901760, %v9569_v19 }
 0x284   : > { %v1352_v52 = vsub.f32 %v1350_v37, %v1351_v47 }
 0x285   : > { %1261 = vrot.lane.b32.xlu1 %v9556_v14, %s9294_s24  ;;  %v1342_v21 = vsub.f32 %v9569_v19, %v1341_v20 }
 0x286   : > { %1255 = vrot.lane.b32.xlu0 %v9558_v16, %s9296_s15  ;;  %v1353_v55 = vand.u32 4294901760, %v1352_v52 }
 0x287   : > { %v1343_v22 = vand.u32 4294901760, %v1342_v21 }
 0x289   : > { %1253 = vrot.lane.b32.xlu1 %v9556_v14, %s9295_s16  ;;  %7933 = vmatprep.mubr.f32.mxu1 %v1343_v22  ;;  %s10164_s16 = sld [smem:[#allocation6_spill]] }
 0x28d   : > { %1257 = vrot.lane.b32.xlu1 %v9556_v14, %s9296_s15 }
 0x28f   : > { %s10167_s30 = sand.u32 1, %s10164_s16  }
 0x2ef   : > { %v9581_v23 = vpop.permute.xlu1 %1249 }
 0x2f0   : > { %1776 = vrot.lane.b32.xlu1 %v9581_v23, %s9294_s24  ;;  %v9585_v24 = vpop.permute.xlu0 %1247  ;;  %v1780_v1 = vsel %vm1263_vm2, %v9581_v23, 0 }
 0x2f1   : > { %v1778_v26 = vsel %vm1263_vm2, %v9585_v24, 0  ;;  %1774 = vrot.lane.b32.xlu0 %v9585_v24, %s9294_s24  ;;  %v9639_v2 = vand.u32 4294901760, %v1780_v1 }
 0x2f2   : > { %v9593_v27 = vand.u32 4294901760, %v1778_v26 }
 0x2f3   : > { %v1260_v28 = vpop.permute.xlu1 %1259  ;;  %v9642_v4 = vsub.f32 %v1780_v1, %v9639_v2 }
 0x2f4   : > { %v9596_v30 = vsub.f32 %v1778_v26, %v9593_v27  ;;  %v1268_v31 = vsel %vm1263_vm2, %v1260_v28, 0  ;;  %v9599_v32 = vpop.permute.xlu0 %1251 }
 0x2f5   : > { %v1273_v33 = vand.u32 4294901760, %v1268_v31  ;;  %2288 = vrot.lane.b32.xlu0 %v9599_v32, %s9294_s24  ;;  %v2292_v59 = vsel %vm1263_vm2, %v9599_v32, 0  ;;  %v1865_v11 = vand.u32 4294901760, %v9642_v4 }
 0x2f6   : > { %v1855_v34 = vand.u32 4294901760, %v9596_v30  ;;  %v9626_v60 = vand.u32 4294901760, %v2292_v59 }
 0x2f7   : > { %v1361_v35 = vsub.f32 %v1268_v31, %v1273_v33  ;;  %v1262_v36 = vpop.permute.xlu1 %1261  ;;  %v1866_v28 = vsub.f32 %v9642_v4, %v1865_v11 }
 0x2f8   : > { %v1270_v38 = vsel %vm1263_vm2, %v1262_v36, 0  ;;  %v9605_v39 = vpop.permute.xlu0 %1255  ;;  %v1856_v40 = vsub.f32 %v9596_v30, %v1855_v34  ;;  %v9630_v61 = vsub.f32 %v2292_v59, %v9626_v60 }
 0x2f9   : > { %v1362_v41 = vand.u32 4294901760, %v1361_v35  ;;  %v1276_v42 = vand.u32 4294901760, %v1270_v38  ;;  %2802 = vrot.lane.b32.xlu0 %v9605_v39, %s9294_s24 }
 0x2fa   : > { %v1857_v43 = vand.u32 4294901760, %v1856_v40  ;;  %v2369_v62 = vand.u32 4294901760, %v9630_v61 }
 0x2fb   : > { %v8559_v44 = vpack.c.bf16 %v1276_v42, %v1273_v33  ;;  %v1368_v45 = vsub.f32 %v1270_v38, %v1276_v42  ;;  %v9612_v46 = vpop.permute.xlu1 %1253  ;;  %v1363_v48 = vsub.f32 %v1361_v35, %v1362_v41  ;;  %v1867_v38 = vand.u32 4294901760, %v1866_v28 }
 0x2fc   : > { %2290 = vrot.lane.b32.xlu1 %v9612_v46, %s9294_s24  ;;  %7975 = vmatprep.mubr.f32.mxu0 %v1857_v43  ;;  %v2370_v63 = vsub.f32 %v9630_v61, %v2369_v62  ;;  %v2294_v12 = vsel %vm1263_vm2, %v9612_v46, 0 }
 0x2fd   : > { %v1369_v49 = vand.u32 4294901760, %v1368_v45  ;;  %8560 = vmatprep.subr.bf16.mxu1 %v8559_v44  ;;  %v1364_v53 = vand.u32 4294901760, %v1363_v48  ;;  %v8567_v57 = vpack.c.bf16 %v1368_v45, %v1361_v35  ;;  %v9653_v22 = vand.u32 4294901760, %v2294_v12 }
 0x2fe   : > { %8562 = vmatpush3.bf16.xpose.msra.mxu1 %v8559_v44  ;;  %v2371_v0 = vand.u32 4294901760, %v2370_v63 }
 0x2ff   : > { %v1370_v50 = vsub.f32 %v1368_v45, %v1369_v49  ;;  %v9616_v51 = vpop.permute.xlu1 %1257  ;;  %v8575_v58 = vpack.c.bf16 %v1369_v49, %v1362_v41  ;;  %v9662_v35 = vsub.f32 %v2294_v12, %v9653_v22 }
 0x300   : > { %2804 = vrot.lane.b32.xlu1 %v9616_v51, %s9294_s24 }
 0x301   : > { %v1371_v54 = vand.u32 4294901760, %v1370_v50 }
 0x303   : > { %v8563_v56 = vpack.c.bf16 %v1371_v54, %v1364_v53 }
 0x305   : > { %7934 = vmatmul.mubr.f32.vlgmr.msra.gmra.mrb[0].mxu1 %v1353_v55  ;;  %8564 = vmatprep.subr.bf16.mxu1 %v8563_v56 }
 0x306   : > { %8566 = vmatpush3.bf16.xpose.msra.mxu1 %v8563_v56  ;;  %7940 = vmatprep.mubr.f32.mxu1 %v9564_v18 }
 0x307   : > { %8568 = vmatprep.subr.bf16.mxu1 %v8567_v57 }
 0x30d   : > { %7941 = vmatmul.mubr.f32.vlgmr.msra.gmra.mrb[0].mxu1 %v1349_v29 }
 0x30e   : > { %8570 = vmatpush3.bf16.xpose.msra.mxu1 %v8567_v57  ;;  %7947 = vmatprep.mubr.f32.mxu1 %v9569_v19 }
 0x30f   : > { %8572 = vmatprep.subr.bf16.mxu1 %v8559_v44 }
 0x315   : > { %7948 = vmatmul.mubr.f32.vlgmr.msra.gmra.mrb[0].mxu1 %v1350_v37 }
 0x316   : > { %8574 = vmatpush3.bf16.xpose.msra.mxu1 %v8559_v44  ;;  %7954 = vmatprep.mubr.f32.mxu1 %v1341_v20 }
 0x317   : > { %8576 = vmatprep.subr.bf16.mxu1 %v8575_v58 }
 0x31d   : > { %7955 = vmatmul.mubr.f32.vlgmr.msra.gmra.mrb[0].mxu1 %v1351_v47 }
 0x31e   : > { %8578 = vmatpush3.bf16.xpose.msra.mxu1 %v8575_v58  ;;  %7961 = vmatprep.mubr.f32.mxu1 %v9564_v18 }
 0x31f   : > { %8580 = vmatprep.subr.bf16.mxu1 %v8559_v44 }
 0x325   : > { %7962 = vmatmul.mubr.f32.vlgmr.msra.gmra.mrb[0].mxu1 %v1349_v29 }
 0x326   : > { %8582 = vmatpush3.bf16.xpose.msra.mxu1 %v8559_v44  ;;  %7968 = vmatprep.mubr.f32.mxu1 %v9564_v18  ;;  %v2379_v44 = vand.u32 4294901760, %v9662_v35 }
 0x328   : > { %v2380_v52 = vsub.f32 %v9662_v35, %v2379_v44 }
 0x32a   : > { %v2381_v55 = vand.u32 4294901760, %v2380_v52 }
 0x32d   : > { %7969 = vmatmul.mubr.f32.vlgmr.msra.gmra.mrb[0].mxu1 %v1349_v29 }
 0x32e   : > { %8017 = vmatprep.mubr.f32.mxu1 %v2371_v0 }
 0x362   : > { %v1777_v3 = vpop.permute.xlu1 %1776 }
 0x363   : > { %v1784_v5 = vsel %vm1263_vm2, %v1777_v3, 0  ;;  %v1775_v6 = vpop.permute.xlu0 %1774  ;;  %v2806_v3 = vsel %vm1263_vm2, %v9605_v39, 0 }
 0x364   : > { %v1790_v7 = vand.u32 4294901760, %v1784_v5  ;;  %v1782_v8 = vsel %vm1263_vm2, %v1775_v6, 0 }
 0x365   : > { %v1787_v9 = vand.u32 4294901760, %v1782_v8 }
 0x366   : > { %v1882_v10 = vsub.f32 %v1784_v5, %v1790_v7 }
 0x367   : > { %v9649_v13 = vpack.c.bf16 %v1790_v7, %v1787_v9  ;;  %v1875_v15 = vsub.f32 %v1782_v8, %v1787_v9  ;;  %v2289_v17 = vpop.permute.xlu0 %2288  ;;  %v9692_v7 = vand.u32 4294901760, %v2806_v3  ;;  %v2808_v9 = vsel %vm1263_vm2, %v9616_v51, 0 }
 0x368   : > { %v1883_v18 = vand.u32 4294901760, %v1882_v10  ;;  %v2296_v19 = vsel %vm1263_vm2, %v2289_v17, 0 }
 0x369   : > { %v1876_v20 = vand.u32 4294901760, %v1875_v15  ;;  %v2301_v21 = vand.u32 4294901760, %v2296_v19  ;;  %8584 = vmatprep.subr.bf16.mxu0 %v9649_v13  ;;  %v8591_v43 = vpack.c.bf16 %v1882_v10, %v1875_v15 }
 0x36a   : > { %v1884_v25 = vsub.f32 %v1882_v10, %v1883_v18  ;;  %8586 = vmatpush3.bf16.xpose.msra.mxu0 %v9649_v13 }
 0x36b   : > { %v1877_v26 = vsub.f32 %v1875_v15, %v1876_v20  ;;  %v9659_v29 = vsub.f32 %v2296_v19, %v2301_v21  ;;  %v2803_v59 = vpop.permute.xlu0 %2802  ;;  %v8599_v63 = vpack.c.bf16 %v1883_v18, %v1876_v20 }
 0x36c   : > { %v1885_v31 = vand.u32 4294901760, %v1884_v25  ;;  %v2810_v1 = vsel %vm1263_vm2, %v2803_v59, 0 }
 0x36d   : > { %v1878_v33 = vand.u32 4294901760, %v1877_v26  ;;  %v2390_v41 = vand.u32 4294901760, %v9659_v29  ;;  %v2815_v6 = vand.u32 4294901760, %v2810_v1 }
 0x36e   : > { %v2291_v36 = vpop.permute.xlu1 %2290 }
 0x36f   : > { %v2298_v37 = vsel %vm1263_vm2, %v2291_v36, 0  ;;  %v8587_v40 = vpack.c.bf16 %v1885_v31, %v1878_v33  ;;  %v2391_v48 = vsub.f32 %v9659_v29, %v2390_v41 }
 0x370   : > { %v2304_v42 = vand.u32 4294901760, %v2298_v37 }
 0x371   : > { %7976 = vmatmul.mubr.f32.vlgmr.msra.gmra.mrb[2].mxu0 %v1867_v38  ;;  %8588 = vmatprep.subr.bf16.mxu0 %v8587_v40  ;;  %v2392_v53 = vand.u32 4294901760, %v2391_v48 }
 0x372   : > { %v9667_v45 = vpack.c.bf16 %v2304_v42, %v2301_v21  ;;  %v2396_v47 = vsub.f32 %v2298_v37, %v2304_v42  ;;  %8590 = vmatpush3.bf16.xpose.msra.mxu0 %v8587_v40  ;;  %7982 = vmatprep.mubr.f32.mxu0 %v9593_v27  ;;  %v2805_v58 = vpop.permute.xlu1 %2804 }
 0x373   : > { %8592 = vmatprep.subr.bf16.mxu0 %v8591_v43  ;;  %v2812_v0 = vsel %vm1263_vm2, %v2805_v58, 0 }
 0x374   : > { %v2397_v49 = vand.u32 4294901760, %v2396_v47  ;;  %8608 = vmatprep.subr.bf16.mxu1 %v9667_v45  ;;  %v8615_v57 = vpack.c.bf16 %v2396_v47, %v9659_v29  ;;  %v2818_v5 = vand.u32 4294901760, %v2812_v0 }
 0x375   : > { %8610 = vmatpush3.bf16.xpose.msra.mxu1 %v9667_v45 }
 0x376   : > { %v2398_v50 = vsub.f32 %v2396_v47, %v2397_v49  ;;  %v2910_v8 = vsub.f32 %v2812_v0, %v2818_v5  ;;  %v8623_v10 = vpack.c.bf16 %v2397_v49, %v2390_v41  ;;  %v8631_v17 = vpack.c.bf16 %v2818_v5, %v2815_v6 }
 0x378   : > { %v2399_v54 = vand.u32 4294901760, %v2398_v50  ;;  %v2911_v12 = vand.u32 4294901760, %v2910_v8 }
 0x379   : > { %7983 = vmatmul.mubr.f32.vlgmr.msra.gmra.mrb[2].mxu0 %v9639_v2 }
 0x37a   : > { %8594 = vmatpush3.bf16.xpose.msra.mxu0 %v8591_v43  ;;  %7989 = vmatprep.mubr.f32.mxu0 %v9596_v30  ;;  %v8611_v56 = vpack.c.bf16 %v2399_v54, %v2392_v53  ;;  %v2903_v30 = vsub.f32 %v2810_v1, %v2815_v6  ;;  %v2912_v18 = vsub.f32 %v2910_v8, %v2911_v12 }
 0x37b   : > { %8596 = vmatprep.subr.bf16.mxu0 %v9649_v13 }
 0x37c   : > { %8018 = vmatmul.mubr.f32.vlgmr.msra.gmra.mrb[2].mxu1 %v2381_v55  ;;  %8612 = vmatprep.subr.bf16.mxu1 %v8611_v56  ;;  %v8639_v29 = vpack.c.bf16 %v2910_v8, %v2903_v30 }
 0x37d   : > { %8614 = vmatpush3.bf16.xpose.msra.mxu1 %v8611_v56  ;;  %8024 = vmatprep.mubr.f32.mxu1 %v9626_v60 }
 0x37e   : > { %8616 = vmatprep.subr.bf16.mxu1 %v8615_v57 }
 0x381   : > { %7990 = vmatmul.mubr.f32.vlgmr.msra.gmra.mrb[2].mxu0 %v9642_v4  ;;  %v2891_v4 = vand.u32 4294901760, %v2808_v9 }
 0x382   : > { %8598 = vmatpush3.bf16.xpose.msra.mxu0 %v9649_v13  ;;  %7996 = vmatprep.mubr.f32.mxu0 %v1855_v34  ;;  %v2882_v34 = vsub.f32 %v2806_v3, %v9692_v7 }
 0x383   : > { %8600 = vmatprep.subr.bf16.mxu0 %v8599_v63  ;;  %v2892_v19 = vsub.f32 %v2808_v9, %v2891_v4 }
 0x384   : > { %8025 = vmatmul.mubr.f32.vlgmr.msra.gmra.mrb[2].mxu1 %v9653_v22  ;;  %v2883_v15 = vand.u32 4294901760, %v2882_v34 }
 0x385   : > { %8618 = vmatpush3.bf16.xpose.msra.mxu1 %v8615_v57  ;;  %8031 = vmatprep.mubr.f32.mxu1 %v9630_v61  ;;  %v2893_v21 = vand.u32 4294901760, %v2892_v19 }
 0x386   : > { %8620 = vmatprep.subr.bf16.mxu1 %v9667_v45  ;;  %v2884_v61 = vsub.f32 %v2882_v34, %v2883_v15 }
 0x388   : > { %v2885_v26 = vand.u32 4294901760, %v2884_v61 }
 0x389   : > { %7997 = vmatmul.mubr.f32.vlgmr.msra.gmra.mrb[2].mxu0 %v1865_v11  ;;  %v2904_v11 = vand.u32 4294901760, %v2903_v30 }
 0x38a   : > { %8602 = vmatpush3.bf16.xpose.msra.mxu0 %v8599_v63  ;;  %8003 = vmatprep.mubr.f32.mxu0 %v9593_v27 }
 0x38b   : > { %8604 = vmatprep.subr.bf16.mxu0 %v9649_v13  ;;  %v2905_v20 = vsub.f32 %v2903_v30, %v2904_v11 }
 0x38c   : > { %8032 = vmatmul.mubr.f32.vlgmr.msra.gmra.mrb[2].mxu1 %v9662_v35 }
 0x38d   : > { %8622 = vmatpush3.bf16.xpose.msra.mxu1 %v9667_v45  ;;  %8038 = vmatprep.mubr.f32.mxu1 %v2369_v62  ;;  %v2913_v62 = vand.u32 4294901760, %v2912_v18  ;;  %v2906_v25 = vand.u32 4294901760, %v2905_v20 }
 0x38e   : > { %8624 = vmatprep.subr.bf16.mxu1 %v8623_v10 }
 0x391   : > { %8004 = vmatmul.mubr.f32.vlgmr.msra.gmra.mrb[2].mxu0 %v9639_v2 }
 0x392   : > { %8606 = vmatpush3.bf16.xpose.msra.mxu0 %v9649_v13  ;;  %8010 = vmatprep.mubr.f32.mxu0 %v9593_v27  ;;  %v8635_v13 = vpack.c.bf16 %v2913_v62, %v2906_v25  ;;  %v2894_v27 = vsub.f32 %v2892_v19, %v2893_v21 }
 0x393   : > { %8632 = vmatprep.subr.bf16.mxu0 %v8631_v17 }
 0x394   : > { %8039 = vmatmul.mubr.f32.vlgmr.msra.gmra.mrb[2].mxu1 %v2379_v44  ;;  %v2895_v28 = vand.u32 4294901760, %v2894_v27 }
 0x395   : > { %8626 = vmatpush3.bf16.xpose.msra.mxu1 %v8623_v10  ;;  %8045 = vmatprep.mubr.f32.mxu1 %v9626_v60 }
 0x396   : > { %8628 = vmatprep.subr.bf16.mxu1 %v9667_v45 }
 0x399   : > { %8011 = vmatmul.mubr.f32.vlgmr.msra.gmra.mrb[2].mxu0 %v9639_v2  ;;  %v8647_v2 = vpack.c.bf16 %v2911_v12, %v2904_v11 }
 0x39a   : > { %8634 = vmatpush3.bf16.xpose.msra.mxu0 %v8631_v17  ;;  %8059 = vmatprep.mubr.f32.mxu0 %v2885_v26 }
 0x39b   : > { %8636 = vmatprep.subr.bf16.mxu0 %v8635_v13 }
 0x39c   : > { %8046 = vmatmul.mubr.f32.vlgmr.msra.gmra.mrb[2].mxu1 %v9653_v22 }
 0x39d   : > { %8630 = vmatpush3.bf16.xpose.msra.mxu1 %v9667_v45  ;;  %8052 = vmatprep.mubr.f32.mxu1 %v9626_v60 }
 0x3a1   : > { %8060 = vmatmul.mubr.f32.vlgmr.msra.gmra.mrb[4].mxu0 %v2895_v28 }
 0x3a2   : > { %8638 = vmatpush3.bf16.xpose.msra.mxu0 %v8635_v13  ;;  %8066 = vmatprep.mubr.f32.mxu0 %v9692_v7 }
 0x3a3   : > { %8640 = vmatprep.subr.bf16.mxu0 %v8639_v29 }
 0x3a4   : > { %8053 = vmatmul.mubr.f32.vlgmr.msra.gmra.mrb[2].mxu1 %v9653_v22 }
 0x3a9   : > { %8067 = vmatmul.mubr.f32.vlgmr.msra.gmra.mrb[4].mxu0 %v2891_v4 }
 0x3aa   : > { %8642 = vmatpush3.bf16.xpose.msra.mxu0 %v8639_v29  ;;  %8073 = vmatprep.mubr.f32.mxu0 %v2882_v34 }
 0x3ab   : > { %8644 = vmatprep.subr.bf16.mxu0 %v8631_v17 }
 0x3b1   : > { %8074 = vmatmul.mubr.f32.vlgmr.msra.gmra.mrb[4].mxu0 %v2892_v19 }
 0x3b2   : > { %8646 = vmatpush3.bf16.xpose.msra.mxu0 %v8631_v17  ;;  %8080 = vmatprep.mubr.f32.mxu0 %v2883_v15 }
 0x3b3   : > { %8648 = vmatprep.subr.bf16.mxu0 %v8647_v2 }
 0x3b9   : > { %8081 = vmatmul.mubr.f32.vlgmr.msra.gmra.mrb[4].mxu0 %v2893_v21 }
 0x3ba   : > { %8650 = vmatpush3.bf16.xpose.msra.mxu0 %v8647_v2  ;;  %8087 = vmatprep.mubr.f32.mxu0 %v9692_v7 }
 0x3bb   : > { %8652 = vmatprep.subr.bf16.mxu0 %v8631_v17 }
 0x3c1   : > { %8088 = vmatmul.mubr.f32.vlgmr.msra.gmra.mrb[4].mxu0 %v2891_v4 }
 0x3c2   : > { %8654 = vmatpush3.bf16.xpose.msra.mxu0 %v8631_v17  ;;  %8094 = vmatprep.mubr.f32.mxu0 %v9692_v7 }
 0x3c9   : > { %8095 = vmatmul.mubr.f32.vlgmr.msra.gmra.mrb[4].mxu0 %v2891_v4 }
 0x400   : > { %v7970_v60 = vpop.f32.mrb[0].mxu1 }
 0x401   : > { %v3317_v22 = vmul.f32 0.35355338, %v7970_v60  ;;  %v1764_v31 = vpop.f32.mrb[1].mxu1 }
 0x402   : > { %v3316_v33 = vmul.f32 0.35355338, %v1764_v31 }
 0x403   : > { %v3328_v35 = vsel %vm3324_vm3, %v3317_v22, -inf }
 0x404   : > { %3329 = vmax.xlane.f32.xlu1 %v3328_v35  ;;  %v3325_v36 = vsel %vm3324_vm3, %v3316_v33, -inf }
 0x405   : > { %3326 = vmax.xlane.f32.xlu0 %v3325_v36 }
 0x46c   : > { %v8012_v37 = vpop.f32.mrb[2].mxu0 }
 0x46d   : > { %v2278_v38 = vpop.f32.mrb[3].mxu0  ;;  %v3319_v41 = vmul.f32 0.35355338, %v8012_v37 }
 0x46e   : > { %v3318_v40 = vmul.f32 0.35355338, %v2278_v38 }
 0x46f   : > { %v3334_v43 = vsel %vm3324_vm3, %v3319_v41, -inf }
 0x470   : > { %v3331_v42 = vsel %vm3324_vm3, %v3318_v40, -inf }
 0x471   : > { %3332 = vmax.xlane.f32.xlu0 %v3331_v42 }
 0x475   : > { %3335 = vmax.xlane.f32.xlu0 %v3334_v43 }
 0x477   : > { %v8054_v44 = vpop.f32.mrb[2].mxu1 }
 0x478   : > { %v3321_v45 = vmul.f32 0.35355338, %v8054_v44  ;;  %v2792_v47 = vpop.f32.mrb[3].mxu1 }
 0x479   : > { %v3320_v48 = vmul.f32 0.35355338, %v2792_v47 }
 0x47a   : > { %v3340_v49 = vsel %vm3324_vm3, %v3321_v45, -inf }
 0x47b   : > { %3341 = vmax.xlane.f32.xlu1 %v3340_v49  ;;  %v3337_v50 = vsel %vm3324_vm3, %v3320_v48, -inf }
 0x47c   : > { %3338 = vmax.xlane.f32.xlu0 %v3337_v50 }
 0x491   : > { %v3330_v52 = vpop.xlane.xlu1 %3329 }
 0x492   : > { %v3350_v53 = vsub.f32 %v3317_v22, %v3330_v52  ;;  %v3327_v54 = vpop.xlane.xlu0 %3326 }
 0x493   : > { %v3349_v55 = vsub.f32 %v3316_v33, %v3327_v54 }
 0x494   : > { %v3359_v56 = vmul.f32 1.442695, %v3350_v53 }
 0x495   : > { %v3357_v57 = vmul.f32 1.442695, %v3349_v55 }
 0x496   : > { %9155 = vpow2.f32 %v3359_v56 }
 0x497   : > { %9157 = vpow2.f32 %v3357_v57 }
 0x49c   : > { %v8096_v58 = vpop.f32.mrb[4].mxu0 }
 0x49d   : > { %v3323_v59 = vmul.f32 0.35355338, %v8096_v58  ;;  %v3306_v63 = vpop.f32.mrb[5].mxu0 }
 0x49e   : > { %v3322_v0 = vmul.f32 0.35355338, %v3306_v63 }
 0x49f   : > { %v3346_v1 = vsel %vm3324_vm3, %v3323_v59, -inf }
 0x4a0   : > { %v9156_v3 = vpop.eup %9155  ;;  %3347 = vmax.xlane.f32.xlu0 %v3346_v1  ;;  %v3343_v7 = vsel %vm3324_vm3, %v3322_v0, -inf }
 0x4a1   : > { %v3376_v5 = vsel %vm3324_vm3, %v9156_v3, 0.0  ;;  %v9728_v6 = vpop.eup %9157 }
 0x4a2   : > { %3377 = vadd.xlane.f32.xlu1 %v3376_v5  ;;  %v3373_v8 = vsel %vm3324_vm3, %v9728_v6, 0.0 }
 0x4a4   : > { %3344 = vmax.xlane.f32.xlu0 %v3343_v7 }
 0x4a6   : > { %3374 = vadd.xlane.f32.xlu1 %v3373_v8 }
 0x4b7   : > { %3415 = vrot.lane.b32.xlu1 %v9556_v14, %s9297_s21 }
 0x4ba   : > { %3413 = vrot.lane.b32.xlu0 %v9558_v16, %s9297_s21 }
 0x4fe   : > { %v3333_v30 = vpop.xlane.xlu0 %3332 }
 0x4ff   : > { %v3351_v34 = vsub.f32 %v3318_v40, %v3333_v30 }
 0x501   : > { %v3361_v9 = vmul.f32 1.442695, %v3351_v34 }
 0x502   : > { %v3336_v10 = vpop.xlane.xlu0 %3335 }
 0x503   : > { %9159 = vpow2.f32 %v3361_v9  ;;  %v3352_v12 = vsub.f32 %v3319_v41, %v3336_v10 }
 0x505   : > { %v3363_v4 = vmul.f32 1.442695, %v3352_v12 }
 0x507   : > { %9161 = vpow2.f32 %v3363_v4 }
 0x508   : > { %v3342_v18 = vpop.xlane.xlu1 %3341 }
 0x509   : > { %v3339_v16 = vpop.xlane.xlu0 %3338  ;;  %v3354_v62 = vsub.f32 %v3321_v45, %v3342_v18 }
 0x50a   : > { %v3353_v20 = vsub.f32 %v3320_v48, %v3339_v16 }
 0x50b   : > { %v3367_v27 = vmul.f32 1.442695, %v3354_v62 }
 0x50c   : > { %v3365_v26 = vmul.f32 1.442695, %v3353_v20 }
 0x50d   : > { %v9737_v11 = vpop.eup %9159 }
 0x50e   : > { %v3379_v15 = vsel %vm3324_vm3, %v9737_v11, 0.0 }
 0x50f   : > { %3380 = vadd.xlane.f32.xlu1 %v3379_v15 }
 0x511   : > { %v9741_v17 = vpop.eup %9161 }
 0x512   : > { %v3382_v14 = vsel %vm3324_vm3, %v9741_v17, 0.0 }
 0x513   : > { %3383 = vadd.xlane.f32.xlu0 %v3382_v14 }
 0x520   : > { %3929 = vrot.lane.b32.xlu1 %v9581_v23, %s9297_s21 }
 0x529   : > { %3927 = vrot.lane.b32.xlu0 %v9585_v24, %s9297_s21 }
 0x52d   : > { %v3348_v19 = vpop.xlane.xlu0 %3347 }
 0x52e   : > { %v3356_v21 = vsub.f32 %v3323_v59, %v3348_v19 }
 0x52f   : > { %v3378_v61 = vpop.xlane.xlu1 %3377 }
 0x530   : > { %9163 = vrcp.f32 %v3378_v61  ;;  %v3371_v28 = vmul.f32 1.442695, %v3356_v21 }
 0x531   : > { %v3345_v25 = vpop.xlane.xlu0 %3344 }
 0x532   : > { %v3355_v23 = vsub.f32 %v3322_v0, %v3345_v25 }
 0x533   : > { %v3375_v13 = vpop.xlane.xlu1 %3374 }
 0x534   : > { %9165 = vrcp.f32 %v3375_v13  ;;  %v3369_v33 = vmul.f32 1.442695, %v3355_v23 }
 0x535   : > { %v3414_v29 = vpop.permute.xlu0 %3413  ;;  %9167 = vpow2.f32 %v3365_v26 }
 0x536   : > { %v3426_v2 = vand.u32 4294901760, %v3414_v29  ;;  %9169 = vpow2.f32 %v3367_v27 }
 0x537   : > { %v3416_v60 = vpop.permute.xlu1 %3415  ;;  %9171 = vpow2.f32 %v3371_v28 }
 0x538   : > { %v3514_v24 = vsub.f32 %v3414_v29, %v3426_v2  ;;  %v3429_v22 = vand.u32 4294901760, %v3416_v60  ;;  %9173 = vpow2.f32 %v3369_v33 }
 0x53a   : > { %v9164_v31 = vpop.eup %9163  ;;  %v3515_v35 = vand.u32 4294901760, %v3514_v24  ;;  %v8655_v36 = vpack.c.bf16 %v3429_v22, %v3426_v2  ;;  %v3521_v37 = vsub.f32 %v3416_v60, %v3429_v22 }
 0x53b   : > { %v3406_v38 = vmul.f32 %v9164_v31, %v9156_v3 }
 0x53c   : > { %v3516_v40 = vsub.f32 %v3514_v24, %v3515_v35  ;;  %v3522_v41 = vand.u32 4294901760, %v3521_v37  ;;  %8656 = vmatprep.subr.bf16.mxu1 %v8655_v36  ;;  %v8663_v9 = vpack.c.bf16 %v3521_v37, %v3514_v24 }
 0x53d   : > { %8658 = vmatpush3.bf16.msra.mxu1 %v8655_v36  ;;  %v3423_v42 = vsel %vm3324_vm3, %v3406_v38, 0 }
 0x53e   : > { %v9166_v43 = vpop.eup %9165  ;;  %v3523_v44 = vsub.f32 %v3521_v37, %v3522_v41  ;;  %v3502_v45 = vand.u32 4294901760, %v3423_v42  ;;  %v3517_v49 = vand.u32 4294901760, %v3516_v40  ;;  %v8671_v10 = vpack.c.bf16 %v3522_v41, %v3515_v35 }
 0x53f   : > { %v3405_v47 = vmul.f32 %v9166_v43, %v9728_v6  ;;  %v9751_v48 = vpop.eup %9167 }
 0x540   : > { %v3524_v50 = vand.u32 4294901760, %v3523_v44  ;;  %v3503_v52 = vsub.f32 %v3423_v42, %v3502_v45  ;;  %v9754_v54 = vpop.eup %9169  ;;  %v3385_v58 = vsel %vm3324_vm3, %v9751_v48, 0.0 }
 0x541   : > { %v3420_v53 = vsel %vm3324_vm3, %v3405_v47, 0  ;;  %v9756_v57 = vpop.eup %9171  ;;  %v3388_v1 = vsel %vm3324_vm3, %v9754_v54, 0.0 }
 0x542   : > { %v8659_v55 = vpack.c.bf16 %v3524_v50, %v3517_v49  ;;  %v3492_v56 = vand.u32 4294901760, %v3420_v53  ;;  %v3504_v59 = vand.u32 4294901760, %v3503_v52  ;;  %v3394_v3 = vsel %vm3324_vm3, %v9756_v57, 0.0  ;;  %v9764_v6 = vpop.eup %9173 }
 0x543   : > { %v3391_v30 = vsel %vm3324_vm3, %v9764_v6, 0.0 }
 0x544   : > { %3386 = vadd.xlane.f32.xlu1 %v3385_v58  ;;  %8660 = vmatprep.subr.bf16.mxu1 %v8659_v55  ;;  %v3493_v63 = vsub.f32 %v3420_v53, %v3492_v56  ;;  %v3505_v5 = vsub.f32 %v3503_v52, %v3504_v59 }
 0x546   : > { %v3494_v0 = vand.u32 4294901760, %v3493_v63  ;;  %v3506_v34 = vand.u32 4294901760, %v3505_v5 }
 0x548   : > { %3389 = vadd.xlane.f32.xlu0 %v3388_v1  ;;  %3395 = vadd.xlane.f32.xlu1 %v3394_v3  ;;  %v3495_v7 = vsub.f32 %v3493_v63, %v3494_v0 }
 0x54a   : > { %v3496_v8 = vand.u32 4294901760, %v3495_v7 }
 0x54c   : > { %8101 = vmatprep.mubr.f32.mxu1 %v3496_v8  ;;  %3392 = vadd.xlane.f32.xlu0 %v3391_v30 }
 0x54d   : > { %8102 = vmatmul.mubr.f32.vlgmr.msra.gmra.mrb[4].mxu1 %v3506_v34 }
 0x54e   : > { %8662 = vmatpush3.bf16.msra.mxu1 %v8659_v55  ;;  %8108 = vmatprep.mubr.f32.mxu1 %v3492_v56 }
 0x54f   : > { %8664 = vmatprep.subr.bf16.mxu1 %v8663_v9 }
 0x555   : > { %8109 = vmatmul.mubr.f32.vlgmr.msra.gmra.mrb[4].mxu1 %v3502_v45 }
 0x556   : > { %8666 = vmatpush3.bf16.msra.mxu1 %v8663_v9  ;;  %8115 = vmatprep.mubr.f32.mxu1 %v3493_v63 }
 0x557   : > { %8668 = vmatprep.subr.bf16.mxu1 %v8655_v36 }
 0x559   : > { %4443 = vrot.lane.b32.xlu1 %v9612_v46, %s9297_s21 }
 0x55d   : > { %4955 = vrot.lane.b32.xlu1 %v9605_v39, %s9297_s21  ;;  %8116 = vmatmul.mubr.f32.vlgmr.msra.gmra.mrb[4].mxu1 %v3503_v52 }
 0x55e   : > { %8670 = vmatpush3.bf16.msra.mxu1 %v8655_v36  ;;  %8122 = vmatprep.mubr.f32.mxu1 %v3494_v0 }
 0x55f   : > { %8672 = vmatprep.subr.bf16.mxu1 %v8671_v10 }
 0x561   : > { %4957 = vrot.lane.b32.xlu1 %v9616_v51, %s9297_s21 }
 0x562   : > { %4441 = vrot.lane.b32.xlu0 %v9599_v32, %s9297_s21 }
 0x565   : > { %8123 = vmatmul.mubr.f32.vlgmr.msra.gmra.mrb[4].mxu1 %v3504_v59 }
 0x566   : > { %8674 = vmatpush3.bf16.msra.mxu1 %v8671_v10  ;;  %8129 = vmatprep.mubr.f32.mxu1 %v3492_v56 }
 0x567   : > { %8676 = vmatprep.subr.bf16.mxu1 %v8655_v36 }
 0x56d   : > { %8130 = vmatmul.mubr.f32.vlgmr.msra.gmra.mrb[4].mxu1 %v3502_v45 }
 0x56e   : > { %8678 = vmatpush3.bf16.msra.mxu1 %v8655_v36  ;;  %8136 = vmatprep.mubr.f32.mxu1 %v3492_v56 }
 0x575   : > { %8137 = vmatmul.mubr.f32.vlgmr.msra.gmra.mrb[4].mxu1 %v3502_v45 }
 0x59c   : > { %v3381_v39 = vpop.xlane.xlu1 %3380 }
 0x59d   : > { %9175 = vrcp.f32 %v3381_v39 }
 0x5a0   : > { %v3930_v46 = vpop.permute.xlu1 %3929  ;;  %v3384_v12 = vpop.xlane.xlu0 %3383 }
 0x5a1   : > { %v3943_v4 = vand.u32 4294901760, %v3930_v46  ;;  %9177 = vrcp.f32 %v3384_v12 }
 0x5a3   : > { %v4035_v15 = vsub.f32 %v3930_v46, %v3943_v4 }
 0x5a4   : > { %v3928_v14 = vpop.permute.xlu0 %3927 }
 0x5a5   : > { %v4036_v51 = vand.u32 4294901760, %v4035_v15  ;;  %v3940_v16 = vand.u32 4294901760, %v3928_v14 }
 0x5a7   : > { %v9176_v18 = vpop.eup %9175  ;;  %v8679_v32 = vpack.c.bf16 %v3943_v4, %v3940_v16  ;;  %v4028_v19 = vsub.f32 %v3928_v14, %v3940_v16  ;;  %v4037_v61 = vsub.f32 %v4035_v15, %v4036_v51 }
 0x5a8   : > { %v3407_v20 = vmul.f32 %v9176_v18, %v9737_v11 }
 0x5a9   : > { %v4029_v62 = vand.u32 4294901760, %v4028_v19  ;;  %8680 = vmatprep.subr.bf16.mxu1 %v8679_v32  ;;  %v4038_v29 = vand.u32 4294901760, %v4037_v61  ;;  %v8687_v38 = vpack.c.bf16 %v4035_v15, %v4028_v19 }
 0x5aa   : > { %8682 = vmatpush3.bf16.msra.mxu1 %v8679_v32  ;;  %v3934_v21 = vsel %vm3324_vm3, %v3407_v20, 0 }
 0x5ab   : > { %v9178_v25 = vpop.eup %9177  ;;  %v4030_v26 = vsub.f32 %v4028_v19, %v4029_v62  ;;  %v4006_v13 = vand.u32 4294901760, %v3934_v21 }
 0x5ac   : > { %v3408_v27 = vmul.f32 %v9178_v25, %v9741_v17  ;;  %v8695_v17 = vpack.c.bf16 %v4036_v51, %v4029_v62 }
 0x5ad   : > { %v4031_v28 = vand.u32 4294901760, %v4030_v26  ;;  %v4007_v23 = vsub.f32 %v3934_v21, %v4006_v13 }
 0x5ae   : > { %v3937_v2 = vsel %vm3324_vm3, %v3408_v27, 0 }
 0x5af   : > { %v8683_v60 = vpack.c.bf16 %v4038_v29, %v4031_v28  ;;  %v4008_v24 = vand.u32 4294901760, %v4007_v23  ;;  %v4016_v22 = vand.u32 4294901760, %v3937_v2 }
 0x5b1   : > { %8684 = vmatprep.subr.bf16.mxu1 %v8683_v60  ;;  %v4009_v11 = vsub.f32 %v4007_v23, %v4008_v24  ;;  %v4017_v31 = vsub.f32 %v3937_v2, %v4016_v22 }
 0x5b3   : > { %v4010_v33 = vand.u32 4294901760, %v4009_v11  ;;  %v4018_v35 = vand.u32 4294901760, %v4017_v31 }
 0x5b5   : > { %8143 = vmatprep.mubr.f32.mxu1 %v4010_v33  ;;  %v4019_v36 = vsub.f32 %v4017_v31, %v4018_v35 }
 0x5b7   : > { %v4020_v37 = vand.u32 4294901760, %v4019_v36 }
 0x5b9   : > { %8144 = vmatmul.mubr.f32.vlgmr.msra.gmra.mrb[6].mxu1 %v4020_v37 }
 0x5ba   : > { %8686 = vmatpush3.bf16.msra.mxu1 %v8683_v60  ;;  %8150 = vmatprep.mubr.f32.mxu1 %v4006_v13 }
 0x5bb   : > { %8688 = vmatprep.subr.bf16.mxu1 %v8687_v38 }
 0x5c1   : > { %8151 = vmatmul.mubr.f32.vlgmr.msra.gmra.mrb[6].mxu1 %v4016_v22 }
 0x5c2   : > { %8690 = vmatpush3.bf16.msra.mxu1 %v8687_v38  ;;  %8157 = vmatprep.mubr.f32.mxu1 %v4007_v23 }
 0x5c3   : > { %8692 = vmatprep.subr.bf16.mxu1 %v8679_v32 }
 0x5c9   : > { %8158 = vmatmul.mubr.f32.vlgmr.msra.gmra.mrb[6].mxu1 %v4017_v31 }
 0x5ca   : > { %8694 = vmatpush3.bf16.msra.mxu1 %v8679_v32  ;;  %8164 = vmatprep.mubr.f32.mxu1 %v4008_v24 }
 0x5cb   : > { %8696 = vmatprep.subr.bf16.mxu1 %v8695_v17 }
 0x5d1   : > { %v3387_v40 = vpop.xlane.xlu1 %3386  ;;  %8165 = vmatmul.mubr.f32.vlgmr.msra.gmra.mrb[6].mxu1 %v4018_v35 }
 0x5d2   : > { %9179 = vrcp.f32 %v3387_v40  ;;  %8698 = vmatpush3.bf16.msra.mxu1 %v8695_v17  ;;  %8171 = vmatprep.mubr.f32.mxu1 %v4006_v13 }
 0x5d3   : > { %8700 = vmatprep.subr.bf16.mxu1 %v8679_v32 }
 0x5d5   : > { %v3396_v41 = vpop.xlane.xlu1 %3395  ;;  %v3390_v42 = vpop.xlane.xlu0 %3389 }
 0x5d6   : > { %9181 = vrcp.f32 %v3396_v41 }
 0x5d7   : > { %9183 = vrcp.f32 %v3390_v42 }
 0x5d9   : > { %v4444_v43 = vpop.permute.xlu1 %4443  ;;  %8172 = vmatmul.mubr.f32.vlgmr.msra.gmra.mrb[6].mxu1 %v4016_v22  ;;  %v3393_v44 = vpop.xlane.xlu0 %3392 }
 0x5da   : > { %v4457_v45 = vand.u32 4294901760, %v4444_v43  ;;  %8702 = vmatpush3.bf16.msra.mxu1 %v8679_v32  ;;  %9185 = vrcp.f32 %v3393_v44  ;;  %8178 = vmatprep.mubr.f32.mxu1 %v4006_v13 }
 0x5dc   : > { %v9180_v47 = vpop.eup %9179  ;;  %v9780_v49 = vsub.f32 %v4444_v43, %v4457_v45 }
 0x5dd   : > { %v3409_v50 = vmul.f32 %v9180_v47, %v9751_v48  ;;  %v4956_v52 = vpop.permute.xlu1 %4955  ;;  %v4442_v53 = vpop.permute.xlu0 %4441 }
 0x5de   : > { %v4550_v55 = vand.u32 4294901760, %v9780_v49  ;;  %v4968_v56 = vand.u32 4294901760, %v4956_v52  ;;  %v4454_v58 = vand.u32 4294901760, %v4442_v53 }
 0x5df   : > { %v4448_v59 = vsel %vm3324_vm3, %v3409_v50, 0  ;;  %v5500_v50 = vld [vmem:[%s9475_s23] sm:$0xff] }
 0x5e0   : > { %v9182_v63 = vpop.eup %9181  ;;  %v4551_v0 = vsub.f32 %v9780_v49, %v4550_v55  ;;  %v9788_v1 = vsub.f32 %v4956_v52, %v4968_v56  ;;  %v9790_v3 = vpack.c.bf16 %v4457_v45, %v4454_v58  ;;  %v9792_v5 = vsub.f32 %v4442_v53, %v4454_v58  ;;  %v5501_v52 = vld [vmem:[%s9475_s23 + $0x8] sm:$0xff]  ;;  %v5503_v58 = vld [vmem:[%s9475_s23 + $0x18] sm:$0xff] }
 0x5e1   : > { %v9184_v48 = vpop.eup %9183  ;;  %v3412_v7 = vmul.f32 %v9182_v63, %v9756_v57  ;;  %v4958_v8 = vpop.permute.xlu1 %4957  ;;  %8179 = vmatmul.mubr.f32.vlgmr.msra.gmra.mrb[6].mxu1 %v4016_v22  ;;  %v9795_v30 = vand.u32 4294901760, %v4448_v59  ;;  %v5518_v53 = vand.u32 4294901760, %v5500_v50  ;;  %v5527_v63 = vand.u32 4294901760, %v5503_v58 }
 0x5e2   : > { %v3410_v34 = vmul.f32 %v9184_v48, %v9754_v54  ;;  %v5057_v9 = vand.u32 4294901760, %v9788_v1  ;;  %v4543_v10 = vand.u32 4294901760, %v9792_v5  ;;  %v4971_v39 = vand.u32 4294901760, %v4958_v8  ;;  %8704 = vmatprep.subr.bf16.mxu0 %v9790_v3 }
 0x5e3   : > { %8706 = vmatpush3.bf16.msra.mxu0 %v9790_v3  ;;  %v9803_v46 = vsub.f32 %v4448_v59, %v9795_v30  ;;  %v4965_v57 = vsel %vm3324_vm3, %v3412_v7, 0  ;;  %v4552_v14 = vand.u32 4294901760, %v4551_v0  ;;  %v8711_v38 = vpack.c.bf16 %v9780_v49, %v9792_v5 }
 0x5e4   : > { %v9186_v12 = vpop.eup %9185  ;;  %v4544_v4 = vsub.f32 %v9792_v5, %v4543_v10  ;;  %v9809_v54 = vpack.c.bf16 %v4971_v39, %v4968_v56  ;;  %v5063_v15 = vsub.f32 %v4958_v8, %v4971_v39  ;;  %v4451_v18 = vsel %vm3324_vm3, %v3410_v34, 0  ;;  %v5502_v56 = vld [vmem:[%s9475_s23 + $0x10] sm:$0xff]  ;;  %s9300_s23 = smov 24  }
 0x5e5   : > { %v3411_v51 = vmul.f32 %v9186_v12, %v9764_v6  ;;  %v4522_v16 = vand.u32 4294901760, %v9803_v46  ;;  %v9814_v32 = vand.u32 4294901760, %v4965_v57  ;;  %v5058_v19 = vsub.f32 %v9788_v1, %v5057_v9 }
 0x5e6   : > { %v5064_v20 = vand.u32 4294901760, %v5063_v15  ;;  %8728 = vmatprep.subr.bf16.mxu1 %v9809_v54  ;;  %v4545_v61 = vand.u32 4294901760, %v4544_v4  ;;  %v9820_v62 = vand.u32 4294901760, %v4451_v18  ;;  %v8735_v41 = vpack.c.bf16 %v5063_v15, %v9788_v1 }
 0x5e7   : > { %8730 = vmatpush3.bf16.msra.mxu1 %v9809_v54  ;;  %v4523_v6 = vsub.f32 %v9803_v46, %v4522_v16  ;;  %v4962_v21 = vsel %vm3324_vm3, %v3411_v51, 0  ;;  %v5045_v25 = vsub.f32 %v4965_v57, %v9814_v32  ;;  %v5059_v60 = vand.u32 4294901760, %v5058_v19 }
 0x5e8   : > { %v5065_v26 = vsub.f32 %v5063_v15, %v5064_v20  ;;  %v8707_v13 = vpack.c.bf16 %v4552_v14, %v4545_v61  ;;  %v4531_v27 = vsub.f32 %v4451_v18, %v9820_v62  ;;  %v5034_v28 = vand.u32 4294901760, %v4962_v21 }
 0x5e9   : > { %v4524_v29 = vand.u32 4294901760, %v4523_v6  ;;  %v5046_v23 = vand.u32 4294901760, %v5045_v25  ;;  %v8719_v42 = vpack.c.bf16 %v4550_v55, %v4543_v10  ;;  %v8743_v43 = vpack.c.bf16 %v5064_v20, %v5057_v9 }
 0x5ea   : > { %8708 = vmatprep.subr.bf16.mxu0 %v8707_v13  ;;  %v4532_v2 = vand.u32 4294901760, %v4531_v27  ;;  %v5066_v24 = vand.u32 4294901760, %v5065_v26  ;;  %v5035_v22 = vsub.f32 %v4962_v21, %v5034_v28  ;;  %v5521_v55 = vand.u32 4294901760, %v5501_v52 }
 0x5eb   : > { %8185 = vmatprep.mubr.f32.mxu0 %v4524_v29  ;;  %v5047_v35 = vsub.f32 %v5045_v25, %v5046_v23  ;;  %v5524_v59 = vand.u32 4294901760, %v5502_v56  ;;  %v5629_v57 = vsub.f32 %v5503_v58, %v5527_v63 }
 0x5ec   : > { %v4533_v11 = vsub.f32 %v4531_v27, %v4532_v2  ;;  %v8731_v31 = vpack.c.bf16 %v5066_v24, %v5059_v60  ;;  %v5036_v33 = vand.u32 4294901760, %v5035_v22  ;;  %v9860_v1 = vpack.c.bf16 %v5521_v55, %v5518_v53 }
 0x5ed   : > { %v5048_v40 = vand.u32 4294901760, %v5047_v35  ;;  %v5615_v5 = vsub.f32 %v5501_v52, %v5521_v55  ;;  %v9862_v7 = vpack.c.bf16 %v5527_v63, %v5524_v59  ;;  %v5630_v15 = vand.u32 4294901760, %v5629_v57  ;;  %v9195_v52 = vld [vmem:[%s9508_s26 + $0x8] sm:$0xff]  ;;  %v9196_v55 = vld [vmem:[%s9508_s26] sm:$0xff] }
 0x5ee   : > { %v4534_v36 = vand.u32 4294901760, %v4533_v11  ;;  %8732 = vmatprep.subr.bf16.mxu1 %v8731_v31  ;;  %v5037_v37 = vsub.f32 %v5035_v22, %v5036_v33 }
 0x5f0   : > { %8186 = vmatmul.mubr.f32.vlgmr.msra.gmra.mrb[6].mxu0 %v4534_v36  ;;  %v5038_v17 = vand.u32 4294901760, %v5037_v37 }
 0x5f1   : > { %8710 = vmatpush3.bf16.msra.mxu0 %v8707_v13  ;;  %8192 = vmatprep.mubr.f32.mxu0 %v9795_v30 }
 0x5f2   : > { %8712 = vmatprep.subr.bf16.mxu0 %v8711_v38  ;;  %8227 = vmatprep.mubr.f32.mxu1 %v5038_v17 }
 0x5f3   : > { %8228 = vmatmul.mubr.f32.vlgmr.msra.gmra.mrb[8].mxu1 %v5048_v40 }
 0x5f4   : > { %8734 = vmatpush3.bf16.msra.mxu1 %v8731_v31  ;;  %8234 = vmatprep.mubr.f32.mxu1 %v5034_v28 }
 0x5f5   : > { %8736 = vmatprep.subr.bf16.mxu1 %v8735_v41 }
 0x5f8   : > { %8193 = vmatmul.mubr.f32.vlgmr.msra.gmra.mrb[6].mxu0 %v9820_v62 }
 0x5f9   : > { %8714 = vmatpush3.bf16.msra.mxu0 %v8711_v38  ;;  %8199 = vmatprep.mubr.f32.mxu0 %v9803_v46  ;;  %v5622_v46 = vsub.f32 %v5502_v56, %v5524_v59 }
 0x5fa   : > { %8716 = vmatprep.subr.bf16.mxu0 %v9790_v3 }
 0x5fb   : > { %8235 = vmatmul.mubr.f32.vlgmr.msra.gmra.mrb[8].mxu1 %v9814_v32  ;;  %v8771_v61 = vpack.c.bf16 %v5629_v57, %v5622_v46 }
 0x5fc   : > { %8738 = vmatpush3.bf16.msra.mxu1 %v8735_v41  ;;  %8241 = vmatprep.mubr.f32.mxu1 %v5035_v22 }
 0x5fd   : > { %8740 = vmatprep.subr.bf16.mxu1 %v9809_v54 }
 0x600   : > { %8200 = vmatmul.mubr.f32.vlgmr.msra.gmra.mrb[6].mxu0 %v4531_v27 }
 0x601   : > { %8718 = vmatpush3.bf16.msra.mxu0 %v9790_v3  ;;  %8206 = vmatprep.mubr.f32.mxu0 %v4522_v16  ;;  %v5631_v16 = vsub.f32 %v5629_v57, %v5630_v15 }
 0x602   : > { %8720 = vmatprep.subr.bf16.mxu0 %v8719_v42 }
 0x603   : > { %8242 = vmatmul.mubr.f32.vlgmr.msra.gmra.mrb[8].mxu1 %v5045_v25 }
 0x604   : > { %8742 = vmatpush3.bf16.msra.mxu1 %v9809_v54  ;;  %8248 = vmatprep.mubr.f32.mxu1 %v5036_v33 }
 0x605   : > { %8744 = vmatprep.subr.bf16.mxu1 %v8743_v43 }
 0x608   : > { %8207 = vmatmul.mubr.f32.vlgmr.msra.gmra.mrb[6].mxu0 %v4532_v2 }
 0x609   : > { %8722 = vmatpush3.bf16.msra.mxu0 %v8719_v42  ;;  %8213 = vmatprep.mubr.f32.mxu0 %v9795_v30 }
 0x60a   : > { %8724 = vmatprep.subr.bf16.mxu0 %v9790_v3 }
 0x60b   : > { %8249 = vmatmul.mubr.f32.vlgmr.msra.gmra.mrb[8].mxu1 %v5046_v23 }
 0x60c   : > { %8746 = vmatpush3.bf16.msra.mxu1 %v8743_v43  ;;  %8255 = vmatprep.mubr.f32.mxu1 %v5034_v28 }
 0x60d   : > { %8748 = vmatprep.subr.bf16.mxu1 %v9809_v54 }
 0x610   : > { %8214 = vmatmul.mubr.f32.vlgmr.msra.gmra.mrb[6].mxu0 %v9820_v62 }
 0x611   : > { %8726 = vmatpush3.bf16.msra.mxu0 %v9790_v3  ;;  %8220 = vmatprep.mubr.f32.mxu0 %v9795_v30  ;;  %v5608_v3 = vsub.f32 %v5500_v50, %v5518_v53  ;;  %v5616_v30 = vand.u32 4294901760, %v5615_v5 }
 0x612   : > { %8752 = vmatprep.subr.bf16.mxu0 %v9860_v1 }
 0x613   : > { %8256 = vmatmul.mubr.f32.vlgmr.msra.gmra.mrb[8].mxu1 %v9814_v32  ;;  %v5609_v8 = vand.u32 4294901760, %v5608_v3  ;;  %v5617_v39 = vsub.f32 %v5615_v5, %v5616_v30  ;;  %v8767_v20 = vpack.c.bf16 %v5615_v5, %v5608_v3 }
 0x614   : > { %8750 = vmatpush3.bf16.msra.mxu1 %v9809_v54  ;;  %8262 = vmatprep.mubr.f32.mxu1 %v5034_v28  ;;  %v5623_v54 = vand.u32 4294901760, %v5622_v46 }
 0x615   : > { %v5610_v10 = vsub.f32 %v5608_v3, %v5609_v8  ;;  %v5618_v4 = vand.u32 4294901760, %v5617_v39  ;;  %v6093_v39 = vld [vmem:[%s9492_s18 + $0x10] sm:$0xff] }
 0x616   : > { %v5624_v51 = vsub.f32 %v5622_v46, %v5623_v54  ;;  %v8787_v6 = vpack.c.bf16 %v5630_v15, %v5623_v54 }
 0x617   : > { %v5611_v12 = vand.u32 4294901760, %v5610_v10  ;;  %v6092_v10 = vld [vmem:[%s9492_s18 + $0x8] sm:$0xff] }
 0x618   : > { %8221 = vmatmul.mubr.f32.vlgmr.msra.gmra.mrb[6].mxu0 %v9820_v62  ;;  %v5625_v18 = vand.u32 4294901760, %v5624_v51  ;;  %v8783_v62 = vpack.c.bf16 %v5616_v30, %v5609_v8  ;;  %v6112_v57 = vand.u32 4294901760, %v6092_v10 }
 0x619   : > { %8754 = vmatpush3.bf16.msra.mxu0 %v9860_v1  ;;  %v8759_v14 = vpack.c.bf16 %v5618_v4, %v5611_v12  ;;  %v6094_v12 = vld [vmem:[%s9492_s18 + $0x18] sm:$0xff]  ;;  %v6115_v4 = vand.u32 4294901760, %v6093_v39 }
 0x61a   : > { %8756 = vmatprep.subr.bf16.mxu0 %v9862_v7  ;;  %v6118_v54 = vand.u32 4294901760, %v6094_v12 }
 0x61b   : > { %8263 = vmatmul.mubr.f32.vlgmr.msra.gmra.mrb[8].mxu1 %v9814_v32  ;;  %v5632_v32 = vand.u32 4294901760, %v5631_v16  ;;  %v6206_v16 = vsub.f32 %v6092_v10, %v6112_v57 }
 0x61d   : > { %8758 = vmatpush3.bf16.msra.mxu0 %v9862_v7  ;;  %v8763_v19 = vpack.c.bf16 %v5632_v32, %v5625_v18  ;;  %v6207_v32 = vand.u32 4294901760, %v6206_v16 }
 0x61e   : > { %8760 = vmatprep.subr.bf16.mxu0 %v8759_v14 }
 0x648   : > { %v8138_v44 = vpop.f32.mrb[4].mxu1 }
 0x649   : > { %v3917_v45 = vpop.f32.mrb[5].mxu1 }
 0x6b4   : > { %v8180_v47 = vpop.f32.mrb[6].mxu1 }
 0x6b5   : > { %5473 = vrot.lane.b32.xlu1 %v8180_v47, %s9298_s20  ;;  %v4431_v49 = vpop.f32.mrb[7].mxu1 }
 0x6b6   : > { %5471 = vrot.lane.b32.xlu0 %v4431_v49, %s9298_s20 }
 0x6eb   : > { %v8222_v0 = vpop.f32.mrb[6].mxu0 }
 0x6ec   : > { %5481 = vrot.lane.b32.xlu1 %v8222_v0, %s9299_s3  ;;  %v4945_v48 = vpop.f32.mrb[7].mxu0 }
 0x6ed   : > { %5479 = vrot.lane.b32.xlu0 %v4945_v48, %s9299_s3  ;;  %s7274_s3 = sshll.u32 %s9508_s26, 4  ;;  %s10040_s3 = int_to_ptr.vmem [resolvable:$true] %s7274_s3 }
 0x6ee   : > { %v8264_v34 = vpop.f32.mrb[8].mxu1  ;;  %p9204_p5 = scmp.lt.s32.totalorder %s10040_s3, %s9202_s14 }
 0x6ef   : > { %v5459_v9 = vpop.f32.mrb[9].mxu1 }
 0x6f0   : > { %5489 = vrot.lane.b32.xlu1 %v8264_v34, %s9300_s23 }
 0x6f1   : > { %5487 = vrot.lane.b32.xlu0 %v5459_v9, %s9300_s23  ;;  %v6091_v9 = vld [vmem:[%s9492_s18] sm:$0xff]  ;;  %s9197_s18 = scalar_lea.vmem %s10040_s3, 256 }
 0x6f2   : > { %v6109_v46 = vand.u32 4294901760, %v6091_v9  ;;  %p9198_p1 = scmp.ne.s32.totalorder %s10040_s3, %s9197_s18 }
 0x6f4   : > { %v9905_v15 = vpack.c.bf16 %v6112_v57, %v6109_v46  ;;  %v6199_v51 = vsub.f32 %v6091_v9, %v6109_v46  ;;  %v6656_v9 = vld [vmem:[%s9506_s7 + $0x10] sm:$0xff]  ;;  %v6657_v46 = vld [vmem:[%s9506_s7 + $0x18] sm:$0xff]  ;;  %p9199_p2 = pnand %p9198_p1, %p9422_p3 }
 0x6f5   : > { %v6683_v57 = vand.u32 4294901760, %v6656_v9 }
 0x6f6   : > { %8800 = vmatprep.subr.bf16.mxu1 %v9905_v15  ;;  %v6200_v18 = vand.u32 4294901760, %v6199_v51  ;;  %p9200_p4 = pneg %p9199_p2 }
 0x6f7   : > { %8802 = vmatpush3.bf16.msra.mxu1 %v9905_v15 }
 0x727   : > { %v5474_v21 = vpop.permute.xlu1 %5473 }
 0x728   : > { %v5472_v25 = vpop.permute.xlu0 %5471  ;;  %v5494_v27 = vsel %vm1263_vm2, %v8138_v44, %v5474_v21  ;;  %v7487_v44 = vld [vmem:[%s10160_s27] ss:$0 sm:$0xff] }
 0x729   : > { %v5493_v28 = vsel %vm1263_vm2, %v3917_v45, %v5472_v25 }
 0x75e   : > { %v5482_v26 = vpop.permute.xlu1 %5481 }
 0x75f   : > { %v5480_v13 = vpop.permute.xlu0 %5479  ;;  %v5496_v29 = vsel %vm3324_vm3, %v5494_v27, %v5482_v26 }
 0x760   : > { %v5495_v2 = vsel %vm3324_vm3, %v5493_v28, %v5480_v13 }
 0x762   : > { %v5490_v23 = vpop.permute.xlu1 %5489 }
 0x763   : > { %v5499_v60 = vsel %vm5497_vm4, %v5496_v29, %v5490_v23  ;;  %v5488_v24 = vpop.permute.xlu0 %5487 }
 0x764   : > { %v5515_v22 = vsel %vm654_vm1, %v5499_v60, 0  ;;  %v5498_v11 = vsel %vm5497_vm4, %v5495_v2, %v5488_v24  ;;  %v8815_v60 = vpack.c.bf16 %v6206_v16, %v6199_v51 }
 0x765   : > { %v5596_v31 = vand.u32 4294901760, %v5515_v22  ;;  %v5512_v33 = vsel %vm654_vm1, %v5498_v11, 0 }
 0x766   : > { %v5586_v35 = vand.u32 4294901760, %v5512_v33 }
 0x767   : > { %v5597_v36 = vsub.f32 %v5515_v22, %v5596_v31  ;;  %v8831_v22 = vpack.c.bf16 %v6207_v32, %v6200_v18 }
 0x768   : > { %v5587_v37 = vsub.f32 %v5512_v33, %v5586_v35 }
 0x769   : > { %v5598_v38 = vand.u32 4294901760, %v5597_v36 }
 0x76a   : > { %v5588_v17 = vand.u32 4294901760, %v5587_v37 }
 0x76b   : > { %v5599_v40 = vsub.f32 %v5597_v36, %v5598_v38 }
 0x76c   : > { %v5589_v41 = vsub.f32 %v5587_v37, %v5588_v17 }
 0x76d   : > { %v5600_v43 = vand.u32 4294901760, %v5599_v40  ;;  %v7488_v40 = vld [vmem:[%s10162_s17] ss:$0 sm:$0xff]  ;;  %s9203_s17 = scalar_lea.vmem %s9202_s14, 512 }
 0x76e   : > { %v5590_v42 = vand.u32 4294901760, %v5589_v41  ;;  %p9205_p6 = scmp.lt.s32.totalorder %s9203_s17, %s9197_s18 }
 0x770   : > { %8273 = vmatprep.mubr.f32.mxu0 %v5590_v42  ;;  %v7489_v42 = vld [vmem:[%s626_s0] ss:$0 sm:$0xff]  ;;  %p9206_p7 = por %p9205_p6, %p9204_p5 }
 0x771   : > { %8274 = vmatmul.mubr.f32.vlgmr.msra.gmra.mrb[8].mxu0 %v5600_v43 }
 0x772   : > { %8762 = vmatpush3.bf16.msra.mxu0 %v8759_v14  ;;  %8284 = vmatprep.mubr.f32.mxu0 %v5586_v35  ;;  %v9907_v14 = vpack.c.bf16 %v6118_v54, %v6115_v4  ;;  %p9207_p8 = pnand %p9206_p7, %p9200_p4 }
 0x773   : > { %8764 = vmatprep.subr.bf16.mxu0 %v8763_v19 }
 0x774   : > { %8804 = vmatprep.subr.bf16.mxu1 %v9907_v14 }
 0x775   : > { %8806 = vmatpush3.bf16.msra.mxu1 %v9907_v14 }
 0x776   : > { %8766 = vmatpush3.bf16.msra.mxu0 %v8763_v19  ;;  %v6201_v19 = vsub.f32 %v6199_v51, %v6200_v18 }
 0x777   : > { %8768 = vmatprep.subr.bf16.mxu0 %v8767_v20 }
 0x779   : > { %8285 = vmatmul.mubr.f32.vlgmr.msra.gmra.mrb[8].mxu0 %v5596_v31 }
 0x77a   : > { %8770 = vmatpush3.bf16.msra.mxu0 %v8767_v20  ;;  %8295 = vmatprep.mubr.f32.mxu0 %v5587_v37  ;;  %v6208_v20 = vsub.f32 %v6206_v16, %v6207_v32  ;;  %v6661_v32 = vld [vmem:[%s9506_s7 + $0x38] sm:$0xff] }
 0x77b   : > { %8772 = vmatprep.subr.bf16.mxu0 %v8771_v61 }
 0x77c   : > { %v6209_v21 = vand.u32 4294901760, %v6208_v20 }
 0x77e   : > { %8774 = vmatpush3.bf16.msra.mxu0 %v8771_v61  ;;  %v6213_v61 = vsub.f32 %v6093_v39, %v6115_v4  ;;  %v6659_v4 = vld [vmem:[%s9506_s7 + $0x28] sm:$0xff] }
 0x77f   : > { %8776 = vmatprep.subr.bf16.mxu0 %v9860_v1  ;;  %v6692_v16 = vand.u32 4294901760, %v6659_v4 }
 0x780   : > { %v6214_v25 = vand.u32 4294901760, %v6213_v61 }
 0x781   : > { %8296 = vmatmul.mubr.f32.vlgmr.msra.gmra.mrb[8].mxu0 %v5597_v36 }
 0x782   : > { %8778 = vmatpush3.bf16.msra.mxu0 %v9860_v1  ;;  %8306 = vmatprep.mubr.f32.mxu0 %v5588_v17  ;;  %v6215_v27 = vsub.f32 %v6213_v61, %v6214_v25 }
 0x783   : > { %8780 = vmatprep.subr.bf16.mxu0 %v9862_v7 }
 0x784   : > { %v6216_v29 = vand.u32 4294901760, %v6215_v27 }
 0x786   : > { %8782 = vmatpush3.bf16.msra.mxu0 %v9862_v7 }
 0x787   : > { %8784 = vmatprep.subr.bf16.mxu0 %v8783_v62 }
 0x789   : > { %8307 = vmatmul.mubr.f32.vlgmr.msra.gmra.mrb[8].mxu0 %v5598_v38 }
 0x78a   : > { %8786 = vmatpush3.bf16.msra.mxu0 %v8783_v62  ;;  %8317 = vmatprep.mubr.f32.mxu0 %v5586_v35  ;;  %v6220_v62 = vsub.f32 %v6094_v12, %v6118_v54  ;;  %v6658_v12 = vld [vmem:[%s9506_s7 + $0x20] sm:$0xff]  ;;  %v6686_v54 = vand.u32 4294901760, %v6657_v46 }
 0x78b   : > { %8788 = vmatprep.subr.bf16.mxu0 %v8787_v6 }
 0x78c   : > { %v6221_v26 = vand.u32 4294901760, %v6220_v62  ;;  %v8819_v24 = vpack.c.bf16 %v6220_v62, %v6213_v61  ;;  %v9941_v18 = vpack.c.bf16 %v6686_v54, %v6683_v57  ;;  %v6698_v61 = vand.u32 4294901760, %v6661_v32 }
 0x78e   : > { %8790 = vmatpush3.bf16.msra.mxu0 %v8787_v6  ;;  %v6202_v6 = vand.u32 4294901760, %v6201_v19  ;;  %v6222_v28 = vsub.f32 %v6220_v62, %v6221_v26  ;;  %v8835_v11 = vpack.c.bf16 %v6221_v26, %v6214_v25 }
 0x78f   : > { %8792 = vmatprep.subr.bf16.mxu0 %v9860_v1 }
 0x790   : > { %v8807_v13 = vpack.c.bf16 %v6209_v21, %v6202_v6  ;;  %v6223_v23 = vand.u32 4294901760, %v6222_v28 }
 0x791   : > { %8318 = vmatmul.mubr.f32.vlgmr.msra.gmra.mrb[8].mxu0 %v5596_v31 }
 0x792   : > { %8794 = vmatpush3.bf16.msra.mxu0 %v9860_v1  ;;  %8328 = vmatprep.mubr.f32.mxu0 %v5586_v35  ;;  %v8811_v2 = vpack.c.bf16 %v6223_v23, %v6216_v29  ;;  %v6785_v29 = vsub.f32 %v6656_v9, %v6683_v57  ;;  %v6792_v23 = vsub.f32 %v6657_v46, %v6686_v54  ;;  %v7490_v9 = vld [vmem:[%s634_s11] ss:$0 sm:$0xff]  ;;  %s10163_s11 = sld [smem:[#allocation9_spill]] }
 0x793   : > { %8796 = vmatprep.subr.bf16.mxu0 %v9862_v7  ;;  %8808 = vmatprep.subr.bf16.mxu1 %v8807_v13 }
 0x796   : > { %8798 = vmatpush3.bf16.msra.mxu0 %v9862_v7 }
 0x798   : > { %s7502_s21 = sshll.u32 %s10163_s11, 8 }
 0x799   : > { %8329 = vmatmul.mubr.f32.vlgmr.msra.gmra.mrb[8].mxu0 %v5596_v31  ;;  %s10037_s27 = scalar_lea.hbm %s10166_s13, %s7502_s21 }
 0x86c   : > { %v8330_v45 = vpop.f32.mrb[8].mxu0 }
 0x86d   : > { %v8945_v47 = vadd.f32 %v8330_v45, %v7487_v44  ;;  %v6035_v49 = vpop.f32.mrb[9].mxu0 }
 0x86e   : > { %v8946_v50 = vadd.f32 %v7487_v44, %v6035_v49 }
 0x86f   : > { %v9888_v53 = vadd.f32 %v9195_v52, %v8945_v47 }
 0x870   : > { %v9891_v56 = vadd.f32 %v9196_v55, %v8946_v50 }
 0x871   : > { %v6050_v58 = vsel %vm654_vm1, %v9888_v53, 0.0 }
 0x872   : > { %6051 = vadd.xlane.f32.xlu1 %v6050_v58  ;;  %v6047_v59 = vsel %vm654_vm1, %v9891_v56, 0.0 }
 0x873   : > { %6048 = vadd.xlane.f32.xlu0 %v6047_v59 }
 0x8ff   : > { %v6052_v63 = vpop.xlane.xlu1 %6051 }
 0x900   : > { %v6054_v0 = vmul.f32 0.03125, %v6052_v63  ;;  %v6049_v1 = vpop.xlane.xlu0 %6048 }
 0x901   : > { %v6053_v3 = vmul.f32 0.03125, %v6049_v1 }
 0x902   : > { %v6056_v5 = vsub.f32 %v9888_v53, %v6054_v0 }
 0x903   : > { %v6055_v48 = vsub.f32 %v9891_v56, %v6053_v3 }
 0x904   : > { %v6058_v30 = vmul.f32 %v6056_v5, %v6056_v5 }
 0x905   : > { %v6057_v7 = vmul.f32 %v6055_v48, %v6055_v48 }
 0x906   : > { %v6062_v34 = vsel %vm654_vm1, %v6058_v30, 0.0 }
 0x907   : > { %v6059_v8 = vsel %vm654_vm1, %v6057_v7, 0.0 }
 0x908   : > { %6060 = vadd.xlane.f32.xlu0 %v6059_v8 }
 0x90c   : > { %6063 = vadd.xlane.f32.xlu0 %v6062_v34  ;;  %v6655_v34 = vld [vmem:[%s9506_s7 + $0x8] sm:$0xff] }
 0x90d   : > { %v6680_v39 = vand.u32 4294901760, %v6655_v34 }
 0x90f   : > { %v6778_v21 = vsub.f32 %v6655_v34, %v6680_v39 }
 0x911   : > { %v6779_v26 = vand.u32 4294901760, %v6778_v21 }
 0x913   : > { %v6780_v28 = vsub.f32 %v6778_v21, %v6779_v26 }
 0x995   : > { %v6061_v31 = vpop.xlane.xlu0 %6060 }
 0x996   : > { %v6065_v33 = vmul.f32 0.03125, %v6061_v31 }
 0x998   : > { %v6067_v35 = vadd.f32 1e-05, %v6065_v33 }
 0x999   : > { %v6064_v36 = vpop.xlane.xlu0 %6063 }
 0x99a   : > { %9187 = vrsqrt.f32 %v6067_v35  ;;  %v6066_v37 = vmul.f32 0.03125, %v6064_v36  ;;  %v6806_v35 = vsub.f32 %v6659_v4, %v6692_v16 }
 0x99c   : > { %v6068_v38 = vadd.f32 1e-05, %v6066_v37 }
 0x99e   : > { %9189 = vrsqrt.f32 %v6068_v38 }
 0x9a4   : > { %v9188_v17 = vpop.eup %9187 }
 0x9a5   : > { %v6071_v41 = vmul.f32 %v9188_v17, %v6055_v48 }
 0x9a7   : > { %v6080_v43 = vmul.f32 %v7488_v40, %v6071_v41 }
 0x9a8   : > { %v9190_v44 = vpop.eup %9189 }
 0x9a9   : > { %v6072_v45 = vmul.f32 %v9190_v44, %v6056_v5  ;;  %v6089_v47 = vadd.f32 %v7489_v42, %v6080_v43  ;;  %v6654_v5 = vld [vmem:[%s9506_s7] sm:$0xff] }
 0x9aa   : > { %v6677_v10 = vand.u32 4294901760, %v6654_v5 }
 0x9ab   : > { %v6081_v49 = vmul.f32 %v7488_v40, %v6072_v45  ;;  %v6103_v50 = vsel %vm654_vm1, %v6089_v47, 0  ;;  %v6807_v40 = vand.u32 4294901760, %v6806_v35 }
 0x9ac   : > { %v6177_v52 = vand.u32 4294901760, %v6103_v50  ;;  %v9939_v51 = vpack.c.bf16 %v6680_v39, %v6677_v10  ;;  %v6771_v6 = vsub.f32 %v6654_v5, %v6677_v10 }
 0x9ad   : > { %v6090_v55 = vadd.f32 %v7489_v42, %v6081_v49  ;;  %v6808_v44 = vsub.f32 %v6806_v35, %v6807_v40  ;;  %v6820_v49 = vsub.f32 %v6661_v32, %v6698_v61 }
 0x9ae   : > { %v6178_v58 = vsub.f32 %v6103_v50, %v6177_v52  ;;  %8896 = vmatprep.subr.bf16.mxu0 %v9939_v51  ;;  %v6772_v25 = vand.u32 4294901760, %v6771_v6 }
 0x9af   : > { %v6106_v59 = vsel %vm654_vm1, %v6090_v55, 0  ;;  %8898 = vmatpush3.bf16.msra.mxu0 %v9939_v51 }
 0x9b0   : > { %v6179_v63 = vand.u32 4294901760, %v6178_v58  ;;  %v6187_v0 = vand.u32 4294901760, %v6106_v59  ;;  %8900 = vmatprep.subr.bf16.mxu0 %v9941_v18  ;;  %v6773_v27 = vsub.f32 %v6771_v6, %v6772_v25 }
 0x9b2   : > { %v6180_v1 = vsub.f32 %v6178_v58, %v6179_v63  ;;  %v6188_v3 = vsub.f32 %v6106_v59, %v6187_v0 }
 0x9b3   : > { %8902 = vmatpush3.bf16.msra.mxu0 %v9941_v18 }
 0x9b4   : > { %v6181_v48 = vand.u32 4294901760, %v6180_v1  ;;  %v6189_v7 = vand.u32 4294901760, %v6188_v3 }
 0x9b6   : > { %8339 = vmatprep.mubr.f32.mxu1 %v6181_v48  ;;  %v6190_v8 = vsub.f32 %v6188_v3, %v6189_v7 }
 0x9b8   : > { %v6191_v30 = vand.u32 4294901760, %v6190_v8  ;;  %v9983_v8 = vpack.c.bf16 %v6778_v21, %v6771_v6 }
 0x9ba   : > { %8340 = vmatmul.mubr.f32.vlgmr.msra.gmra.mrb[10].mxu1 %v6191_v30  ;;  %v9985_v30 = vpack.c.bf16 %v6792_v23, %v6785_v29 }
 0x9bb   : > { %8810 = vmatpush3.bf16.msra.mxu1 %v8807_v13  ;;  %8350 = vmatprep.mubr.f32.mxu1 %v6177_v52  ;;  %v9965_v13 = vpack.c.bf16 %v6779_v26, %v6772_v25 }
 0x9bc   : > { %8812 = vmatprep.subr.bf16.mxu1 %v8811_v2 }
 0x9bf   : > { %8814 = vmatpush3.bf16.msra.mxu1 %v8811_v2  ;;  %v6774_v2 = vand.u32 4294901760, %v6773_v27 }
 0x9c0   : > { %8816 = vmatprep.subr.bf16.mxu1 %v8815_v60 }
 0x9c2   : > { %8351 = vmatmul.mubr.f32.vlgmr.msra.gmra.mrb[10].mxu1 %v6187_v0 }
 0x9c3   : > { %8818 = vmatpush3.bf16.msra.mxu1 %v8815_v60  ;;  %8361 = vmatprep.mubr.f32.mxu1 %v6178_v58  ;;  %v6781_v60 = vand.u32 4294901760, %v6780_v28  ;;  %v6821_v58 = vand.u32 4294901760, %v6820_v49 }
 0x9c4   : > { %8820 = vmatprep.subr.bf16.mxu1 %v8819_v24 }
 0x9c5   : > { %v6822_v1 = vsub.f32 %v6820_v49, %v6821_v58 }
 0x9c7   : > { %8822 = vmatpush3.bf16.msra.mxu1 %v8819_v24  ;;  %v6786_v24 = vand.u32 4294901760, %v6785_v29  ;;  %v6823_v48 = vand.u32 4294901760, %v6822_v1 }
 0x9c8   : > { %8824 = vmatprep.subr.bf16.mxu1 %v9905_v15 }
 0x9c9   : > { %v6787_v31 = vsub.f32 %v6785_v29, %v6786_v24 }
 0x9ca   : > { %8362 = vmatmul.mubr.f32.vlgmr.msra.gmra.mrb[10].mxu1 %v6188_v3 }
 0x9cb   : > { %8826 = vmatpush3.bf16.msra.mxu1 %v9905_v15  ;;  %8372 = vmatprep.mubr.f32.mxu1 %v6179_v63  ;;  %v6788_v38 = vand.u32 4294901760, %v6787_v31 }
 0x9cc   : > { %8828 = vmatprep.subr.bf16.mxu1 %v9907_v14 }
 0x9cf   : > { %8830 = vmatpush3.bf16.msra.mxu1 %v9907_v14 }
 0x9d0   : > { %8832 = vmatprep.subr.bf16.mxu1 %v8831_v22 }
 0x9d2   : > { %8373 = vmatmul.mubr.f32.vlgmr.msra.gmra.mrb[10].mxu1 %v6189_v7 }
 0x9d3   : > { %8834 = vmatpush3.bf16.msra.mxu1 %v8831_v22  ;;  %8383 = vmatprep.mubr.f32.mxu1 %v6177_v52  ;;  %v6793_v22 = vand.u32 4294901760, %v6792_v23 }
 0x9d4   : > { %8836 = vmatprep.subr.bf16.mxu1 %v8835_v11 }
 0x9d5   : > { %v9970_v36 = vpack.c.bf16 %v6793_v22, %v6786_v24  ;;  %v6794_v37 = vsub.f32 %v6792_v23, %v6793_v22 }
 0x9d7   : > { %8838 = vmatpush3.bf16.msra.mxu1 %v8835_v11  ;;  %v9968_v11 = vpack.c.bf16 %v6781_v60, %v6774_v2  ;;  %v6795_v41 = vand.u32 4294901760, %v6794_v37 }
 0x9d8   : > { %8840 = vmatprep.subr.bf16.mxu1 %v9905_v15 }
 0x9d9   : > { %v9975_v47 = vpack.c.bf16 %v6795_v41, %v6788_v38 }
 0x9da   : > { %8384 = vmatmul.mubr.f32.vlgmr.msra.gmra.mrb[10].mxu1 %v6187_v0 }
 0x9db   : > { %8842 = vmatpush3.bf16.msra.mxu1 %v9905_v15  ;;  %8394 = vmatprep.mubr.f32.mxu1 %v6177_v52  ;;  %v6689_v15 = vand.u32 4294901760, %v6658_v12  ;;  %v6809_v52 = vand.u32 4294901760, %v6808_v44 }
 0x9dc   : > { %8844 = vmatprep.subr.bf16.mxu1 %v9907_v14 }
 0x9dd   : > { %v9951_v19 = vpack.c.bf16 %v6692_v16, %v6689_v15  ;;  %v6799_v33 = vsub.f32 %v6658_v12, %v6689_v15 }
 0x9df   : > { %8846 = vmatpush3.bf16.msra.mxu1 %v9907_v14  ;;  %v6660_v14 = vld [vmem:[%s9506_s7 + $0x30] sm:$0xff]  ;;  %8904 = vmatprep.subr.bf16.mxu0 %v9951_v19  ;;  %v6800_v17 = vand.u32 4294901760, %v6799_v33  ;;  %v9987_v5 = vpack.c.bf16 %v6806_v35, %v6799_v33 }
 0x9e0   : > { %8848 = vmatprep.subr.bf16.mxu1 %v9939_v51  ;;  %v6695_v20 = vand.u32 4294901760, %v6660_v14  ;;  %8906 = vmatpush3.bf16.msra.mxu0 %v9951_v19 }
 0x9e1   : > { %v9973_v42 = vpack.c.bf16 %v6807_v40, %v6800_v17  ;;  %v6801_v43 = vsub.f32 %v6799_v33, %v6800_v17 }
 0x9e2   : > { %8395 = vmatmul.mubr.f32.vlgmr.msra.gmra.mrb[10].mxu1 %v6187_v0  ;;  %v9957_v62 = vpack.c.bf16 %v6698_v61, %v6695_v20  ;;  %v6813_v45 = vsub.f32 %v6660_v14, %v6695_v20 }
 0x9e3   : > { %8850 = vmatpush3.bf16.msra.mxu1 %v9939_v51  ;;  %v6802_v50 = vand.u32 4294901760, %v6801_v43 }
 0x9e4   : > { %8852 = vmatprep.subr.bf16.mxu1 %v9941_v18  ;;  %8908 = vmatprep.subr.bf16.mxu0 %v9957_v62  ;;  %v6814_v55 = vand.u32 4294901760, %v6813_v45  ;;  %v9989_v34 = vpack.c.bf16 %v6820_v49, %v6813_v45 }
 0x9e5   : > { %8910 = vmatpush3.bf16.msra.mxu0 %v9957_v62  ;;  %v9977_v59 = vpack.c.bf16 %v6809_v52, %v6802_v50 }
 0x9e6   : > { %8912 = vmatprep.subr.bf16.mxu0 %v9965_v13  ;;  %v6815_v63 = vsub.f32 %v6813_v45, %v6814_v55  ;;  %v9979_v0 = vpack.c.bf16 %v6821_v58, %v6814_v55 }
 0x9e7   : > { %8854 = vmatpush3.bf16.msra.mxu1 %v9941_v18 }
 0x9e8   : > { %8856 = vmatprep.subr.bf16.mxu1 %v9951_v19  ;;  %v6816_v3 = vand.u32 4294901760, %v6815_v63 }
 0x9ea   : > { %v9981_v7 = vpack.c.bf16 %v6823_v48, %v6816_v3 }
 0x9eb   : > { %8858 = vmatpush3.bf16.msra.mxu1 %v9951_v19 }
 0x9ec   : > { %8860 = vmatprep.subr.bf16.mxu1 %v9957_v62 }
 0x9ef   : > { %8862 = vmatpush3.bf16.msra.mxu1 %v9957_v62 }
 0x9f0   : > { %8864 = vmatprep.subr.bf16.mxu1 %v9968_v11 }
 0xab5   : > { %v8396_v10 = vpop.f32.mrb[10].mxu1 }
 0xab6   : > { %v8947_v39 = vadd.f32 %v8396_v10, %v7490_v9  ;;  %v6626_v46 = vpop.f32.mrb[11].mxu1 }
 0xab7   : > { %v8948_v57 = vadd.f32 %v7490_v9, %v6626_v46 }
 0xab8   : > { %v6639_v12 = vmul.f32 0.04475, %v8947_v39  ;;  %v6637_v26 = vmul.f32 0.5, %v8947_v39 }
 0xab9   : > { %v6638_v4 = vmul.f32 0.04475, %v8948_v57  ;;  %v6636_v28 = vmul.f32 0.5, %v8948_v57 }
 0xaba   : > { %v6641_v54 = vmul.f32 %v8947_v39, %v6639_v12 }
 0xabb   : > { %v6640_v15 = vmul.f32 %v8948_v57, %v6638_v4 }
 0xabc   : > { %v6643_v16 = vmul.f32 %v8947_v39, %v6641_v54 }
 0xabd   : > { %v6642_v14 = vmul.f32 %v8948_v57, %v6640_v15 }
 0xabe   : > { %v6645_v32 = vadd.f32 %v8947_v39, %v6643_v16 }
 0xabf   : > { %v6644_v20 = vadd.f32 %v8948_v57, %v6642_v14 }
 0xac0   : > { %v6647_v61 = vmul.f32 0.7978846, %v6645_v32 }
 0xac1   : > { %v6646_v6 = vmul.f32 0.7978846, %v6644_v20 }
 0xac2   : > { %9191 = vtanh.f32 %v6647_v61 }
 0xac3   : > { %9193 = vtanh.f32 %v6646_v6 }
 0xacc   : > { %v9192_v21 = vpop.eup %9191 }
 0xacd   : > { %v9194_v25 = vpop.eup %9193  ;;  %v6651_v27 = vadd.f32 1.0, %v9192_v21 }
 0xace   : > { %v6650_v29 = vadd.f32 1.0, %v9194_v25 }
 0xacf   : > { %v6653_v23 = vmul.f32 %v6651_v27, %v6637_v26 }
 0xad0   : > { %v6652_v2 = vmul.f32 %v6650_v29, %v6636_v28 }
 0xad1   : > { %v6674_v60 = vsel %vm6669_vm5, %v6653_v23, 0 }
 0xad2   : > { %v6671_v24 = vsel %vm6669_vm5, %v6652_v2, 0  ;;  %v6759_v22 = vand.u32 4294901760, %v6674_v60 }
 0xad3   : > { %v6749_v31 = vand.u32 4294901760, %v6671_v24 }
 0xad4   : > { %v6760_v33 = vsub.f32 %v6674_v60, %v6759_v22 }
 0xad5   : > { %v6750_v35 = vsub.f32 %v6671_v24, %v6749_v31 }
 0xad6   : > { %v6761_v37 = vand.u32 4294901760, %v6760_v33 }
 0xad7   : > { %v6751_v38 = vand.u32 4294901760, %v6750_v35 }
 0xad8   : > { %v6762_v17 = vsub.f32 %v6760_v33, %v6761_v37 }
 0xad9   : > { %8470 = vmatprep.mubr.f32.mxu0 %v6751_v38  ;;  %v6752_v40 = vsub.f32 %v6750_v35, %v6751_v38 }
 0xada   : > { %8471 = vmatmul.mubr.f32.vlgmr.msra.gmra.mrb[10].mxu0 %v6761_v37  ;;  %v6763_v43 = vand.u32 4294901760, %v6762_v17 }
 0xadb   : > { %8914 = vmatpush3.bf16.msra.mxu0 %v9965_v13  ;;  %8489 = vmatprep.mubr.f32.mxu0 %v6749_v31  ;;  %v6753_v41 = vand.u32 4294901760, %v6752_v40 }
 0xadc   : > { %8916 = vmatprep.subr.bf16.mxu0 %v9970_v36 }
 0xadd   : > { %8413 = vmatprep.mubr.f32.mxu1 %v6753_v41 }
 0xade   : > { %8414 = vmatmul.mubr.f32.vlgmr.msra.gmra.mrb[12].mxu1 %v6763_v43 }
 0xadf   : > { %8866 = vmatpush3.bf16.msra.mxu1 %v9968_v11  ;;  %8918 = vmatpush3.bf16.msra.mxu0 %v9970_v36 }
 0xae0   : > { %8432 = vmatprep.mubr.f32.mxu1 %v6749_v31  ;;  %8868 = vmatprep.subr.bf16.mxu1 %v9975_v47 }
 0xae1   : > { %8920 = vmatprep.subr.bf16.mxu0 %v9973_v42 }
 0xae3   : > { %8870 = vmatpush3.bf16.msra.mxu1 %v9975_v47  ;;  %8922 = vmatpush3.bf16.msra.mxu0 %v9973_v42 }
 0xae4   : > { %8872 = vmatprep.subr.bf16.mxu1 %v9977_v59  ;;  %8924 = vmatprep.subr.bf16.mxu0 %v9979_v0 }
 0xae7   : > { %8874 = vmatpush3.bf16.msra.mxu1 %v9977_v59  ;;  %8926 = vmatpush3.bf16.msra.mxu0 %v9979_v0 }
 0xae8   : > { %8876 = vmatprep.subr.bf16.mxu1 %v9981_v7  ;;  %8928 = vmatprep.subr.bf16.mxu0 %v9939_v51 }
 0xaea   : > { %8490 = vmatmul.mubr.f32.vlgmr.msra.gmra.mrb[10].mxu0 %v6759_v22 }
 0xaeb   : > { %8878 = vmatpush3.bf16.msra.mxu1 %v9981_v7  ;;  %8930 = vmatpush3.bf16.msra.mxu0 %v9939_v51 }
 0xaec   : > { %8508 = vmatprep.mubr.f32.mxu0 %v6749_v31  ;;  %8880 = vmatprep.subr.bf16.mxu1 %v9983_v8 }
 0xaed   : > { %8932 = vmatprep.subr.bf16.mxu0 %v9941_v18 }
 0xaee   : > { %8433 = vmatmul.mubr.f32.vlgmr.msra.gmra.mrb[12].mxu1 %v6759_v22 }
 0xaef   : > { %8882 = vmatpush3.bf16.msra.mxu1 %v9983_v8  ;;  %8451 = vmatprep.mubr.f32.mxu1 %v6750_v35 }
 0xaf0   : > { %8934 = vmatpush3.bf16.msra.mxu0 %v9941_v18  ;;  %8884 = vmatprep.subr.bf16.mxu1 %v9985_v30 }
 0xaf1   : > { %8936 = vmatprep.subr.bf16.mxu0 %v9951_v19 }
 0xaf3   : > { %8886 = vmatpush3.bf16.msra.mxu1 %v9985_v30 }
 0xaf4   : > { %8938 = vmatpush3.bf16.msra.mxu0 %v9951_v19  ;;  %8888 = vmatprep.subr.bf16.mxu1 %v9987_v5  ;;  %v7491_v19 = vld [vmem:[%s642_s25] ss:$0 sm:$0xff]  ;;  %s10048_s25 = scalar_lea.sflag [#allocation3], %s10167_s30 }
 0xaf5   : > { %8940 = vmatprep.subr.bf16.mxu0 %v9957_v62 }
 0xaf7   : > { %8890 = vmatpush3.bf16.msra.mxu1 %v9987_v5 }
 0xaf8   : > { %8942 = vmatpush3.bf16.msra.mxu0 %v9957_v62  ;;  %8892 = vmatprep.subr.bf16.mxu1 %v9989_v34 }
 0xafb   : > { %8509 = vmatmul.mubr.f32.vlgmr.msra.gmra.mrb[10].mxu0 %v6759_v22  ;;  %8894 = vmatpush3.bf16.msra.mxu1 %v9989_v34 }
 0xafe   : > { %8452 = vmatmul.mubr.f32.vlgmr.msra.gmra.mrb[12].mxu1 %v6760_v33 }
 0xbce   : > { %v8510_v51 = vpop.f32.mrb[10].mxu0 }
 0xbcf   : > { %v7246_v18 = vpop.f32.mrb[11].mxu0 }
 0xbd1   : > { %v8453_v13 = vpop.f32.mrb[12].mxu1 }
 0xbd2   : > { %v8949_v11 = vadd.f32 %v8453_v13, %v7491_v19  ;;  %v6970_v62 = vpop.f32.mrb[13].mxu1 }
 0xbd3   : > { %v8951_v36 = vadd.f32 %v7491_v19, %v6970_v62 }
 0xbd4   : > { %v8950_v42 = vadd.f32 %v8949_v11, %v8510_v51 }
 0xbd5   : > { %v8952_v44 = vadd.f32 %v8951_v36, %v7246_v18 }
 0xbd6   : > { %v7257_v45 = vadd.f32 %v8950_v42, %v9888_v53 }
 0xbd7   : > { %v7256_v47 = vadd.f32 %v8952_v44, %v9891_v56 }
 0xbd8   : > { %7259 = vst.msk [vmem:[%s9508_s26 + $0x8] sm:$0xff] %vm654_vm1, %v7257_v45 }
 0xbd9   : > { %7258 = vst.msk [vmem:[%s9508_s26] sm:$0xff] %vm654_vm1, %v7256_v47 }
 0xbda   : > { %9210 = shalt.err (!%p9207_p8)
}
 0xbdb   : > { %s9211_s26 = scalar_lea.hbm %s10037_s27, 256  ;;  %s9215_s0 = scalar_lea.hbm %s10166_s13, 512 }
 0xbdc   : > { %p9212_p10 = scmp.ne.s32.totalorder %s10037_s27, %s9211_s26  ;;  %p9216_p13 = scmp.lt.u32.totalorder %s10037_s27, %s10166_s13 }
 0xbdd   : > { %p9217_p0 = scmp.lt.u32.totalorder %s9215_s0, %s9211_s26  ;;  %p9219_p2 = scmp.lt.u32.totalorder %s9211_s26, %s10037_s27 }
 0xbde   : > { %p9213_p11 = pnand %p9212_p10, %p9422_p3 }
 0xbdf   : > { %p9218_p1 = por %p9217_p0, %p9216_p13 }
 0xbe0   : > { %p9214_p12 = pneg %p9213_p11 }
 0xbe1   : > { %p9220_p4 = por %p9219_p2, %p9218_p1 }
 0xbe3   : > { %p9221_p5 = pnand %p9220_p4, %p9214_p12 }
 0xbe5   : > { %9224 = shalt.err (!%p9221_p5)
}
 0xbe6   : > { %s9302_s22 = smov 128  }
 0xbe7   : > { %9071 = dma.vmem_to_hbm [thread:$0]  (%p9422_p3), %s10040_s3, 256, %s10037_s27, %s10048_s25, %s9302_s22, %s9302_s22, %s9298_s20  }
 0xbe8 PF: > { %s10168_s24 = sld [smem:[#allocation12_spill]]  ;;  %s10169_s16 = sld [smem:[#allocation5_spill]] }
 0xbee   : > { %p9077_p6 = scmp.ge.s32.totalorder %s10168_s24, 2  ;;  %s7289_s23 = sand.u32 1, %s10169_s16  }
 0xbef   : > { %s7290_s5 = scalar_lea.sflag [#allocation3], %s7289_s23 }
 0xbf0   : > { %p9074_p7 = pnand %p9077_p6, %p9432_p9 }
 0xbf2   : > { %9258 = dma.done.wait (!%p9074_p7), %s7290_s5, 256  }
 0xbf3   : > { %9260 = vsyncadd (!%p9074_p7), %s7290_s5, 4294967040  ;;  %s26_s15 = sadd.s32 1, %s10168_s24   ;;  %s10171_s25 = sld [smem:[#allocation6_spill]] }
 0xbf4   : > { %p23_p8 = scmp.ge.s32.totalorder %s26_s15, 6   ;;  %s10172_s26 = sld [smem:[#allocation7_spill]] }
 0xbf5   : > { %s10173_s27 = sld [smem:[#allocation17_spill]]  ;;  %s10174_s28 = sld [smem:[#allocation10_spill]] }
 0xbf6   : > { %s10175_s29 = sld [smem:[#allocation11_spill]]  ;;  %s10176_s30 = sld [smem:[#allocation13_spill]] }
 0xbf7   : > { %s10177_s14 = sld [smem:[#allocation15_spill]]  ;;  %25 = sbr.rel (!%p23_p8) target bundleno = 12 (0xc), region = 147 }
 0xbfe   :  { %7295 = vsyncpa [#allocation3], 1 }
 0xbff   :  { %7297 = vsyncpa [#allocation3 + $0x1], 1 }

</bundles_post_ra>
